<compile_context>
chip_gen: v5e
topology: v5e:2x2
jax: 0.10.0
libtpu: 0.0.40
codegen_flags: <defaults>
</compile_context>

<pallas_src>
import math

import jax
import jax.numpy as jnp
from jax.experimental import pallas as pl
from jax.experimental.pallas import tpu as pltpu

# ----------------------------- config (small) -------------------------------
VOCAB = 50
D_MODEL = 32
N_HEADS = 4
HEAD_DIM = D_MODEL // N_HEADS
FFN_DIM = 64
N_LAYERS = 2
MAX_POS = 64
POS_OFFSET = 2           # config.extra_pos_embeddings (LearnedPositionalEmbedding)
PAD_IDX = 1
SCALE_EMBEDDING = True
EMBED_SCALE = math.sqrt(D_MODEL) if SCALE_EMBEDDING else 1.0
LN_EPS = 1e-5
NEG_INF = -1e9
VEC_W = max(3 * D_MODEL, FFN_DIM, 2 * D_MODEL)   # packed row-vector width (= 96)


# ----------------------------- kernel helpers -------------------------------
def _ln(x, w, b):
    mu = jnp.mean(x, axis=-1, keepdims=True)
    var = jnp.mean((x - mu) ** 2, axis=-1, keepdims=True)
    return (x - mu) * jax.lax.rsqrt(var + LN_EPS) * w + b


def _gelu(x):  # exact (erf-based) gelu, matches F.gelu default
    return 0.5 * x * (1.0 + jax.lax.erf(x / math.sqrt(2.0)))


# ------------------------------- fused kernel --------------------------------
def encoder_kernel(x_ref, bias_ref, w_ref, fc2_ref, vec_ref, out_ref):
    """Whole encoder in one invocation.  x_ref: (B*S, D) activation slab."""
    x = x_ref[...]                 # (BS, D) f32
    bias = bias_ref[...]           # (BS, BS) f32: key-padding + cross-batch mask
    vecs = vec_ref[...]            # (1 + 5L, VEC_W) f32 packed row vectors

    # layernorm_embedding (normalize_embedding=True); dropout is inference no-op
    x = _ln(x, vecs[0:1, 0:D_MODEL], vecs[0:1, D_MODEL:2 * D_MODEL])

    for l in range(N_LAYERS):                       # static unroll over layers
        wl = w_ref[l]                               # (D, 3D + D + F) bf16
        wqkv = wl[:, 0:3 * D_MODEL]                 # (D, 3D)
        wo = wl[:, 3 * D_MODEL:4 * D_MODEL]         # (D, D)
        fc1w = wl[:, 4 * D_MODEL:4 * D_MODEL + FFN_DIM]  # (D, F)
        fc2w = fc2_ref[l]                           # (F, D) bf16

        base = 1 + 5 * l
        bqkv = vecs[base + 0:base + 1, 0:3 * D_MODEL]
        fc1b = vecs[base + 1:base + 2, 0:FFN_DIM]
        bo = vecs[base + 2:base + 3, 0:D_MODEL]
        fc2b = vecs[base + 2:base + 3, D_MODEL:2 * D_MODEL]
        ln1w = vecs[base + 3:base + 4, 0:D_MODEL]
        ln1b = vecs[base + 3:base + 4, D_MODEL:2 * D_MODEL]
        ln2w = vecs[base + 4:base + 5, 0:D_MODEL]
        ln2b = vecs[base + 4:base + 5, D_MODEL:2 * D_MODEL]

        # --- self attention (post-norm BART encoder layer), fused QKV ---
        qkv = jnp.dot(x.astype(jnp.bfloat16), wqkv,
                      preferred_element_type=jnp.float32) + bqkv   # (BS, 3D) f32
        q = (qkv[:, 0:D_MODEL] * (HEAD_DIM ** -0.5)).astype(jnp.bfloat16)
        k = qkv[:, D_MODEL:2 * D_MODEL].astype(jnp.bfloat16)
        v = qkv[:, 2 * D_MODEL:3 * D_MODEL].astype(jnp.bfloat16)

        ctxs = []
        for hd in range(N_HEADS):
            lo = hd * HEAD_DIM
            qh = q[:, lo:lo + HEAD_DIM]             # (BS, HD) bf16
            kh = k[:, lo:lo + HEAD_DIM]
            vh = v[:, lo:lo + HEAD_DIM]
            # q . k^T without materializing a transpose (contract last dims)
            s = jax.lax.dot_general(qh, kh, (((1,), (1,)), ((), ())),
                                    preferred_element_type=jnp.float32) + bias
            m = jnp.max(s, axis=-1, keepdims=True)
            e = jnp.exp(s - m)
            p = e * pl.reciprocal(jnp.sum(e, axis=-1, keepdims=True), approx=True)
            ctxs.append(jnp.dot(p.astype(jnp.bfloat16), vh,
                                preferred_element_type=jnp.float32))   # (BS, HD) f32
        attn = jnp.concatenate(ctxs, axis=-1)       # (BS, D) f32

        attn_out = jnp.dot(attn.astype(jnp.bfloat16), wo,
                           preferred_element_type=jnp.float32) + bo
        x = _ln(x + attn_out, ln1w, ln1b)

        # --- feed forward ---
        h1 = _gelu(jnp.dot(x.astype(jnp.bfloat16), fc1w,
                           preferred_element_type=jnp.float32) + fc1b)
        ff = jnp.dot(h1.astype(jnp.bfloat16), fc2w,
                     preferred_element_type=jnp.float32) + fc2b
        x = _ln(x + ff, ln2w, ln2b)

    # add_final_layer_norm=False -> no final layer norm
    out_ref[...] = x


# ------------------------------- wrapper --------------------------------------
def pack_params(params):
    """Pack per-layer params into 3 stacked arrays (cuts DMA descriptor count)."""
    def pad_row(v):
        return jnp.pad(v, ((0, 0), (0, VEC_W - v.shape[1])))

    w_big = jnp.stack(
        [jnp.concatenate([lp["wq"], lp["wk"], lp["wv"], lp["wo"], lp["fc1w"]], axis=1)
         for lp in params["layers"]], axis=0).astype(jnp.bfloat16)     # (L, D, 4D+F)
    fc2w = jnp.stack([lp["fc2w"] for lp in params["layers"]],
                     axis=0).astype(jnp.bfloat16)                      # (L, F, D)

    rows = [pad_row(jnp.concatenate([params["ln_emb_w"], params["ln_emb_b"]], axis=1))]
    for lp in params["layers"]:
        rows.append(pad_row(jnp.concatenate([lp["bq"], lp["bk"], lp["bv"]], axis=1)))
        rows.append(pad_row(lp["fc1b"]))
        rows.append(pad_row(jnp.concatenate([lp["bo"], lp["fc2b"]], axis=1)))
        rows.append(pad_row(jnp.concatenate([lp["ln1w"], lp["ln1b"]], axis=1)))
        rows.append(pad_row(jnp.concatenate([lp["ln2w"], lp["ln2b"]], axis=1)))
    vecs = jnp.concatenate(rows, axis=0).astype(jnp.float32)           # (1+5L, VEC_W)

    return dict(w_big=w_big, fc2w=fc2w, vecs=vecs)


def run_encoder(input_ids, attention_mask, params):
    B, S = input_ids.shape
    # inputs_embeds = embed_tokens(input_ids) * embed_scale  (plain-JAX gather)
    x = jnp.take(params["tok_emb"], input_ids, axis=0) * EMBED_SCALE          # (B, S, D)
    # LearnedPositionalEmbedding: positions = arange(S) + offset
    pos = jnp.take(params["pos_emb"], jnp.arange(S) + POS_OFFSET, axis=0)     # (S, D)
    x = (x + pos[None, :, :]).astype(jnp.float32).reshape(B * S, D_MODEL)     # (BS, D)

    # invert_mask -> additive key-padding bias; plus block-diagonal batch mask
    # so the whole batch can share one (BS, BS) score matrix per head.
    pad_bias = jnp.where(attention_mask == 0, NEG_INF, 0.0).astype(jnp.float32)
    key_bias = pad_bias.reshape(B * S)
    row_batch = jnp.repeat(jnp.arange(B), S)
    same_batch = row_batch[:, None] == row_batch[None, :]
    full_bias = jnp.where(same_batch, key_bias[None, :], NEG_INF).astype(jnp.float32)

    pk = pack_params(params)
    vmem = pl.BlockSpec(memory_space=pltpu.MemorySpace.VMEM)
    out = pl.pallas_call(
        encoder_kernel,
        out_shape=jax.ShapeDtypeStruct((B * S, D_MODEL), jnp.float32),
        in_specs=[vmem] * 5,
        out_specs=vmem,
    )(x, full_bias, pk["w_big"], pk["fc2w"], pk["vecs"])
    return out.reshape(B, S, D_MODEL)


# ------------------------- pure-JAX reference (f32) ---------------------------
def _ref_layer(x, bias, lp):
    B, S, D = x.shape
    q = (x @ lp["wq"] + lp["bq"]) * (HEAD_DIM ** -0.5)
    k = x @ lp["wk"] + lp["bk"]
    v = x @ lp["wv"] + lp["bv"]
    q = q.reshape(B, S, N_HEADS, HEAD_DIM)
    k = k.reshape(B, S, N_HEADS, HEAD_DIM)
    v = v.reshape(B, S, N_HEADS, HEAD_DIM)
    s = jnp.einsum("bqhd,bkhd->bhqk", q, k) + bias[:, None, None, :]
    p = jax.nn.softmax(s, axis=-1)
    attn = jnp.einsum("bhqk,bkhd->bqhd", p, v).reshape(B, S, D)
    x1 = _ln(x + attn @ lp["wo"] + lp["bo"], lp["ln1w"], lp["ln1b"])
    h = _gelu(x1 @ lp["fc1w"] + lp["fc1b"])
    ff = h @ lp["fc2w"] + lp["fc2b"]
    return _ln(x1 + ff, lp["ln2w"], lp["ln2b"])


def ref_encoder(input_ids, attention_mask, params):
    x = params["tok_emb"][input_ids] * EMBED_SCALE
    pos = params["pos_emb"][jnp.arange(input_ids.shape[1]) + POS_OFFSET]
    x = x + pos[None]
    x = _ln(x, params["ln_emb_w"], params["ln_emb_b"])
    bias = jnp.where(attention_mask == 0, NEG_INF, 0.0).astype(jnp.float32)
    for lp in params["layers"]:
        x = _ref_layer(x, bias, lp)
    return x


# ------------------------------ params ---------------------------------------
def init_layer(key):
    ks = jax.random.split(key, 16)

    def w(k, shape, scale=0.02):
        return (scale * jax.random.normal(k, shape)).astype(jnp.float32)

    return dict(
        wq=w(ks[0], (D_MODEL, D_MODEL)), bq=w(ks[1], (1, D_MODEL)),
        wk=w(ks[2], (D_MODEL, D_MODEL)), bk=w(ks[3], (1, D_MODEL)),
        wv=w(ks[4], (D_MODEL, D_MODEL)), bv=w(ks[5], (1, D_MODEL)),
        wo=w(ks[6], (D_MODEL, D_MODEL)), bo=w(ks[7], (1, D_MODEL)),
        ln1w=(1.0 + 0.1 * jax.random.normal(ks[8], (1, D_MODEL))).astype(jnp.float32),
        ln1b=w(ks[9], (1, D_MODEL), 0.1),
        fc1w=w(ks[10], (D_MODEL, FFN_DIM)), fc1b=w(ks[11], (1, FFN_DIM)),
        fc2w=w(ks[12], (FFN_DIM, D_MODEL)), fc2b=w(ks[13], (1, D_MODEL)),
        ln2w=(1.0 + 0.1 * jax.random.normal(ks[14], (1, D_MODEL))).astype(jnp.float32),
        ln2b=w(ks[15], (1, D_MODEL), 0.1),
    )


if __name__ == "__main__":
    root = jax.random.PRNGKey(0)
    k_tok, k_pos, k_lnw, k_lnb, k_ids, *layer_keys = jax.random.split(root, 5 + N_LAYERS)

    tok_emb = (0.02 * jax.random.normal(k_tok, (VOCAB, D_MODEL))).astype(jnp.float32)
    tok_emb = tok_emb.at[PAD_IDX].set(0.0)   # nn.Embedding padding_idx row is zero
    pos_emb = (0.02 * jax.random.normal(k_pos, (MAX_POS + POS_OFFSET, D_MODEL))).astype(jnp.float32)

    params = dict(
        tok_emb=tok_emb,
        pos_emb=pos_emb,
        ln_emb_w=(1.0 + 0.1 * jax.random.normal(k_lnw, (1, D_MODEL))).astype(jnp.float32),
        ln_emb_b=(0.1 * jax.random.normal(k_lnb, (1, D_MODEL))).astype(jnp.float32),
        layers=[init_layer(k) for k in layer_keys],
    )

    B, S = 2, 8
    input_ids = jax.random.randint(k_ids, (B, S), 2, VOCAB)
    attention_mask = jnp.ones((B, S), jnp.int32).at[1, 5:].set(0)
    input_ids = jnp.where(attention_mask == 0, PAD_IDX, input_ids)

    out = run_encoder(input_ids, attention_mask, params)
    out = jax.block_until_ready(out)

    ref = ref_encoder(input_ids, attention_mask, params)
    assert out.shape == (B, S, D_MODEL)
    assert bool(jnp.all(jnp.isfinite(out)))
    assert bool(jnp.allclose(out, ref, atol=2e-2, rtol=2e-2)), "mismatch vs JAX reference"
    print("KERNEL_OK")
</pallas_src>

<mosaic_0001>
module attributes {stable_mosaic.version = 11 : i64} {
  func.func @encoder_kernel(%arg0: memref<16x32xf32, #tpu.memory_space<vmem>>, %arg1: memref<16x16xf32, #tpu.memory_space<vmem>>, %arg2: memref<2x32x192xbf16, #tpu.memory_space<vmem>>, %arg3: memref<2x64x32xbf16, #tpu.memory_space<vmem>>, %arg4: memref<11x96xf32, #tpu.memory_space<vmem>>, %arg5: memref<16x32xf32, #tpu.memory_space<vmem>>) attributes {dimension_semantics = [], scalar_prefetch = 0 : i64, scratch_operands = 0 : i64, tpu.core_type = #tpu.core_type<tc>} {
    %c0 = arith.constant 0 : index
    %c0_0 = arith.constant 0 : index
    %0 = vector.load %arg0[%c0, %c0_0] : memref<16x32xf32, #tpu.memory_space<vmem>>, vector<16x32xf32>
    %c0_1 = arith.constant 0 : index
    %c0_2 = arith.constant 0 : index
    %1 = vector.load %arg1[%c0_1, %c0_2] : memref<16x16xf32, #tpu.memory_space<vmem>>, vector<16x16xf32>
    %c0_3 = arith.constant 0 : index
    %c0_4 = arith.constant 0 : index
    %2 = vector.load %arg4[%c0_3, %c0_4] : memref<11x96xf32, #tpu.memory_space<vmem>>, vector<11x96xf32>
    %3 = vector.extract_strided_slice %2 {offsets = [0, 0], sizes = [1, 32], strides = [1, 1]} : vector<11x96xf32> to vector<1x32xf32>
    %4 = vector.extract_strided_slice %2 {offsets = [0, 32], sizes = [1, 32], strides = [1, 1]} : vector<11x96xf32> to vector<1x32xf32>
    %cst = arith.constant dense<0.000000e+00> : vector<16xf32>
    %5 = vector.multi_reduction <add>, %0, %cst [1] : vector<16x32xf32> to vector<16xf32>
    %6 = vector.shape_cast %5 : vector<16xf32> to vector<16x1xf32>
    %cst_5 = arith.constant 3.200000e+01 : f32
    %7 = vector.broadcast %cst_5 : f32 to vector<16x1xf32>
    %8 = arith.divf %6, %7 : vector<16x1xf32>
    %9 = vector.broadcast %8 : vector<16x1xf32> to vector<16x32xf32>
    %10 = arith.subf %0, %9 : vector<16x32xf32>
    %11 = arith.mulf %10, %10 : vector<16x32xf32>
    %cst_6 = arith.constant dense<0.000000e+00> : vector<16xf32>
    %12 = vector.multi_reduction <add>, %11, %cst_6 [1] : vector<16x32xf32> to vector<16xf32>
    %13 = vector.shape_cast %12 : vector<16xf32> to vector<16x1xf32>
    %cst_7 = arith.constant 3.200000e+01 : f32
    %14 = vector.broadcast %cst_7 : f32 to vector<16x1xf32>
    %15 = arith.divf %13, %14 : vector<16x1xf32>
    %16 = vector.broadcast %8 : vector<16x1xf32> to vector<16x32xf32>
    %17 = arith.subf %0, %16 : vector<16x32xf32>
    %cst_8 = arith.constant 9.99999974E-6 : f32
    %18 = vector.broadcast %cst_8 : f32 to vector<16x1xf32>
    %19 = arith.addf %15, %18 : vector<16x1xf32>
    %20 = math.rsqrt %19 : vector<16x1xf32>
    %21 = vector.broadcast %20 : vector<16x1xf32> to vector<16x32xf32>
    %22 = arith.mulf %17, %21 : vector<16x32xf32>
    %23 = vector.broadcast %3 : vector<1x32xf32> to vector<16x32xf32>
    %24 = arith.mulf %22, %23 : vector<16x32xf32>
    %25 = vector.broadcast %4 : vector<1x32xf32> to vector<16x32xf32>
    %26 = arith.addf %24, %25 : vector<16x32xf32>
    %c0_9 = arith.constant 0 : index
    %c0_10 = arith.constant 0 : index
    %c0_11 = arith.constant 0 : index
    %27 = vector.load %arg2[%c0_9, %c0_10, %c0_11] : memref<2x32x192xbf16, #tpu.memory_space<vmem>>, vector<1x32x192xbf16>
    %28 = vector.shape_cast %27 : vector<1x32x192xbf16> to vector<32x192xbf16>
    %29 = vector.extract_strided_slice %28 {offsets = [0, 0], sizes = [32, 96], strides = [1, 1]} : vector<32x192xbf16> to vector<32x96xbf16>
    %30 = vector.extract_strided_slice %28 {offsets = [0, 96], sizes = [32, 32], strides = [1, 1]} : vector<32x192xbf16> to vector<32x32xbf16>
    %31 = vector.extract_strided_slice %28 {offsets = [0, 128], sizes = [32, 64], strides = [1, 1]} : vector<32x192xbf16> to vector<32x64xbf16>
    %c0_12 = arith.constant 0 : index
    %c0_13 = arith.constant 0 : index
    %c0_14 = arith.constant 0 : index
    %32 = vector.load %arg3[%c0_12, %c0_13, %c0_14] : memref<2x64x32xbf16, #tpu.memory_space<vmem>>, vector<1x64x32xbf16>
    %33 = vector.shape_cast %32 : vector<1x64x32xbf16> to vector<64x32xbf16>
    %34 = vector.extract_strided_slice %2 {offsets = [1, 0], sizes = [1, 96], strides = [1, 1]} : vector<11x96xf32> to vector<1x96xf32>
    %35 = vector.extract_strided_slice %2 {offsets = [2, 0], sizes = [1, 64], strides = [1, 1]} : vector<11x96xf32> to vector<1x64xf32>
    %36 = vector.extract_strided_slice %2 {offsets = [3, 0], sizes = [1, 32], strides = [1, 1]} : vector<11x96xf32> to vector<1x32xf32>
    %37 = vector.extract_strided_slice %2 {offsets = [3, 32], sizes = [1, 32], strides = [1, 1]} : vector<11x96xf32> to vector<1x32xf32>
    %38 = vector.extract_strided_slice %2 {offsets = [4, 0], sizes = [1, 32], strides = [1, 1]} : vector<11x96xf32> to vector<1x32xf32>
    %39 = vector.extract_strided_slice %2 {offsets = [4, 32], sizes = [1, 32], strides = [1, 1]} : vector<11x96xf32> to vector<1x32xf32>
    %40 = vector.extract_strided_slice %2 {offsets = [5, 0], sizes = [1, 32], strides = [1, 1]} : vector<11x96xf32> to vector<1x32xf32>
    %41 = vector.extract_strided_slice %2 {offsets = [5, 32], sizes = [1, 32], strides = [1, 1]} : vector<11x96xf32> to vector<1x32xf32>
    %42 = arith.truncf %26 : vector<16x32xf32> to vector<16x32xbf16>
    %cst_15 = arith.constant dense<0.000000e+00> : vector<16x96xf32>
    %43 = tpu.matmul %42, %29, %cst_15 {dimension_numbers = #tpu.dot_dimension_numbers<[1], [0], [0], [1], [0, 0, 1, 1], [], []>} : vector<16x32xbf16>, vector<32x96xbf16>, vector<16x96xf32> -> vector<16x96xf32>
    %44 = vector.broadcast %34 : vector<1x96xf32> to vector<16x96xf32>
    %45 = arith.addf %43, %44 : vector<16x96xf32>
    %46 = vector.extract_strided_slice %45 {offsets = [0, 0], sizes = [16, 32], strides = [1, 1]} : vector<16x96xf32> to vector<16x32xf32>
    %cst_16 = arith.constant 0.353553385 : f32
    %47 = vector.broadcast %cst_16 : f32 to vector<16x32xf32>
    %48 = arith.mulf %46, %47 : vector<16x32xf32>
    %49 = arith.truncf %48 : vector<16x32xf32> to vector<16x32xbf16>
    %50 = vector.extract_strided_slice %45 {offsets = [0, 32], sizes = [16, 32], strides = [1, 1]} : vector<16x96xf32> to vector<16x32xf32>
    %51 = arith.truncf %50 : vector<16x32xf32> to vector<16x32xbf16>
    %52 = vector.extract_strided_slice %45 {offsets = [0, 64], sizes = [16, 32], strides = [1, 1]} : vector<16x96xf32> to vector<16x32xf32>
    %53 = arith.truncf %52 : vector<16x32xf32> to vector<16x32xbf16>
    %54 = vector.extract_strided_slice %49 {offsets = [0, 0], sizes = [16, 8], strides = [1, 1]} : vector<16x32xbf16> to vector<16x8xbf16>
    %55 = vector.extract_strided_slice %51 {offsets = [0, 0], sizes = [16, 8], strides = [1, 1]} : vector<16x32xbf16> to vector<16x8xbf16>
    %56 = vector.extract_strided_slice %53 {offsets = [0, 0], sizes = [16, 8], strides = [1, 1]} : vector<16x32xbf16> to vector<16x8xbf16>
    %cst_17 = arith.constant dense<0.000000e+00> : vector<16x16xf32>
    %57 = tpu.matmul %54, %55, %cst_17 {dimension_numbers = #tpu.dot_dimension_numbers<[1], [1], [0], [0], [0, 0, 1, 0], [], []>} : vector<16x8xbf16>, vector<16x8xbf16>, vector<16x16xf32> -> vector<16x16xf32>
    %58 = arith.addf %57, %1 : vector<16x16xf32>
    %cst_18 = arith.constant dense<0xFF800000> : vector<16xf32>
    %59 = vector.multi_reduction <maximumf>, %58, %cst_18 [1] : vector<16x16xf32> to vector<16xf32>
    %60 = vector.shape_cast %59 : vector<16xf32> to vector<16x1xf32>
    %61 = vector.broadcast %60 : vector<16x1xf32> to vector<16x16xf32>
    %62 = arith.subf %58, %61 : vector<16x16xf32>
    %63 = math.exp %62 : vector<16x16xf32>
    %cst_19 = arith.constant dense<0.000000e+00> : vector<16xf32>
    %64 = vector.multi_reduction <add>, %63, %cst_19 [1] : vector<16x16xf32> to vector<16xf32>
    %65 = vector.shape_cast %64 : vector<16xf32> to vector<16x1xf32>
    %66 = tpu.reciprocal %65 {approx = true} : vector<16x1xf32> -> vector<16x1xf32>
    %67 = vector.broadcast %66 : vector<16x1xf32> to vector<16x16xf32>
    %68 = arith.mulf %63, %67 : vector<16x16xf32>
    %69 = arith.truncf %68 : vector<16x16xf32> to vector<16x16xbf16>
    %cst_20 = arith.constant dense<0.000000e+00> : vector<16x8xf32>
    %70 = tpu.matmul %69, %56, %cst_20 {dimension_numbers = #tpu.dot_dimension_numbers<[1], [0], [0], [1], [0, 0, 1, 1], [], []>} : vector<16x16xbf16>, vector<16x8xbf16>, vector<16x8xf32> -> vector<16x8xf32>
    %71 = vector.extract_strided_slice %49 {offsets = [0, 8], sizes = [16, 8], strides = [1, 1]} : vector<16x32xbf16> to vector<16x8xbf16>
    %72 = vector.extract_strided_slice %51 {offsets = [0, 8], sizes = [16, 8], strides = [1, 1]} : vector<16x32xbf16> to vector<16x8xbf16>
    %73 = vector.extract_strided_slice %53 {offsets = [0, 8], sizes = [16, 8], strides = [1, 1]} : vector<16x32xbf16> to vector<16x8xbf16>
    %cst_21 = arith.constant dense<0.000000e+00> : vector<16x16xf32>
    %74 = tpu.matmul %71, %72, %cst_21 {dimension_numbers = #tpu.dot_dimension_numbers<[1], [1], [0], [0], [0, 0, 1, 0], [], []>} : vector<16x8xbf16>, vector<16x8xbf16>, vector<16x16xf32> -> vector<16x16xf32>
    %75 = arith.addf %74, %1 : vector<16x16xf32>
    %cst_22 = arith.constant dense<0xFF800000> : vector<16xf32>
    %76 = vector.multi_reduction <maximumf>, %75, %cst_22 [1] : vector<16x16xf32> to vector<16xf32>
    %77 = vector.shape_cast %76 : vector<16xf32> to vector<16x1xf32>
    %78 = vector.broadcast %77 : vector<16x1xf32> to vector<16x16xf32>
    %79 = arith.subf %75, %78 : vector<16x16xf32>
    %80 = math.exp %79 : vector<16x16xf32>
    %cst_23 = arith.constant dense<0.000000e+00> : vector<16xf32>
    %81 = vector.multi_reduction <add>, %80, %cst_23 [1] : vector<16x16xf32> to vector<16xf32>
    %82 = vector.shape_cast %81 : vector<16xf32> to vector<16x1xf32>
    %83 = tpu.reciprocal %82 {approx = true} : vector<16x1xf32> -> vector<16x1xf32>
    %84 = vector.broadcast %83 : vector<16x1xf32> to vector<16x16xf32>
    %85 = arith.mulf %80, %84 : vector<16x16xf32>
    %86 = arith.truncf %85 : vector<16x16xf32> to vector<16x16xbf16>
    %cst_24 = arith.constant dense<0.000000e+00> : vector<16x8xf32>
    %87 = tpu.matmul %86, %73, %cst_24 {dimension_numbers = #tpu.dot_dimension_numbers<[1], [0], [0], [1], [0, 0, 1, 1], [], []>} : vector<16x16xbf16>, vector<16x8xbf16>, vector<16x8xf32> -> vector<16x8xf32>
    %88 = vector.extract_strided_slice %49 {offsets = [0, 16], sizes = [16, 8], strides = [1, 1]} : vector<16x32xbf16> to vector<16x8xbf16>
    %89 = vector.extract_strided_slice %51 {offsets = [0, 16], sizes = [16, 8], strides = [1, 1]} : vector<16x32xbf16> to vector<16x8xbf16>
    %90 = vector.extract_strided_slice %53 {offsets = [0, 16], sizes = [16, 8], strides = [1, 1]} : vector<16x32xbf16> to vector<16x8xbf16>
    %cst_25 = arith.constant dense<0.000000e+00> : vector<16x16xf32>
    %91 = tpu.matmul %88, %89, %cst_25 {dimension_numbers = #tpu.dot_dimension_numbers<[1], [1], [0], [0], [0, 0, 1, 0], [], []>} : vector<16x8xbf16>, vector<16x8xbf16>, vector<16x16xf32> -> vector<16x16xf32>
    %92 = arith.addf %91, %1 : vector<16x16xf32>
    %cst_26 = arith.constant dense<0xFF800000> : vector<16xf32>
    %93 = vector.multi_reduction <maximumf>, %92, %cst_26 [1] : vector<16x16xf32> to vector<16xf32>
    %94 = vector.shape_cast %93 : vector<16xf32> to vector<16x1xf32>
    %95 = vector.broadcast %94 : vector<16x1xf32> to vector<16x16xf32>
    %96 = arith.subf %92, %95 : vector<16x16xf32>
    %97 = math.exp %96 : vector<16x16xf32>
    %cst_27 = arith.constant dense<0.000000e+00> : vector<16xf32>
    %98 = vector.multi_reduction <add>, %97, %cst_27 [1] : vector<16x16xf32> to vector<16xf32>
    %99 = vector.shape_cast %98 : vector<16xf32> to vector<16x1xf32>
    %100 = tpu.reciprocal %99 {approx = true} : vector<16x1xf32> -> vector<16x1xf32>
    %101 = vector.broadcast %100 : vector<16x1xf32> to vector<16x16xf32>
    %102 = arith.mulf %97, %101 : vector<16x16xf32>
    %103 = arith.truncf %102 : vector<16x16xf32> to vector<16x16xbf16>
    %cst_28 = arith.constant dense<0.000000e+00> : vector<16x8xf32>
    %104 = tpu.matmul %103, %90, %cst_28 {dimension_numbers = #tpu.dot_dimension_numbers<[1], [0], [0], [1], [0, 0, 1, 1], [], []>} : vector<16x16xbf16>, vector<16x8xbf16>, vector<16x8xf32> -> vector<16x8xf32>
    %105 = vector.extract_strided_slice %49 {offsets = [0, 24], sizes = [16, 8], strides = [1, 1]} : vector<16x32xbf16> to vector<16x8xbf16>
    %106 = vector.extract_strided_slice %51 {offsets = [0, 24], sizes = [16, 8], strides = [1, 1]} : vector<16x32xbf16> to vector<16x8xbf16>
    %107 = vector.extract_strided_slice %53 {offsets = [0, 24], sizes = [16, 8], strides = [1, 1]} : vector<16x32xbf16> to vector<16x8xbf16>
    %cst_29 = arith.constant dense<0.000000e+00> : vector<16x16xf32>
    %108 = tpu.matmul %105, %106, %cst_29 {dimension_numbers = #tpu.dot_dimension_numbers<[1], [1], [0], [0], [0, 0, 1, 0], [], []>} : vector<16x8xbf16>, vector<16x8xbf16>, vector<16x16xf32> -> vector<16x16xf32>
    %109 = arith.addf %108, %1 : vector<16x16xf32>
    %cst_30 = arith.constant dense<0xFF800000> : vector<16xf32>
    %110 = vector.multi_reduction <maximumf>, %109, %cst_30 [1] : vector<16x16xf32> to vector<16xf32>
    %111 = vector.shape_cast %110 : vector<16xf32> to vector<16x1xf32>
    %112 = vector.broadcast %111 : vector<16x1xf32> to vector<16x16xf32>
    %113 = arith.subf %109, %112 : vector<16x16xf32>
    %114 = math.exp %113 : vector<16x16xf32>
    %cst_31 = arith.constant dense<0.000000e+00> : vector<16xf32>
    %115 = vector.multi_reduction <add>, %114, %cst_31 [1] : vector<16x16xf32> to vector<16xf32>
    %116 = vector.shape_cast %115 : vector<16xf32> to vector<16x1xf32>
    %117 = tpu.reciprocal %116 {approx = true} : vector<16x1xf32> -> vector<16x1xf32>
    %118 = vector.broadcast %117 : vector<16x1xf32> to vector<16x16xf32>
    %119 = arith.mulf %114, %118 : vector<16x16xf32>
    %120 = arith.truncf %119 : vector<16x16xf32> to vector<16x16xbf16>
    %cst_32 = arith.constant dense<0.000000e+00> : vector<16x8xf32>
    %121 = tpu.matmul %120, %107, %cst_32 {dimension_numbers = #tpu.dot_dimension_numbers<[1], [0], [0], [1], [0, 0, 1, 1], [], []>} : vector<16x16xbf16>, vector<16x8xbf16>, vector<16x8xf32> -> vector<16x8xf32>
    %122 = tpu.concatenate %70, %87, %104, %121 in 1 : vector<16x8xf32>, vector<16x8xf32>, vector<16x8xf32>, vector<16x8xf32> -> vector<16x32xf32>
    %123 = arith.truncf %122 : vector<16x32xf32> to vector<16x32xbf16>
    %cst_33 = arith.constant dense<0.000000e+00> : vector<16x32xf32>
    %124 = tpu.matmul %123, %30, %cst_33 {dimension_numbers = #tpu.dot_dimension_numbers<[1], [0], [0], [1], [0, 0, 1, 1], [], []>} : vector<16x32xbf16>, vector<32x32xbf16>, vector<16x32xf32> -> vector<16x32xf32>
    %125 = vector.broadcast %36 : vector<1x32xf32> to vector<16x32xf32>
    %126 = arith.addf %124, %125 : vector<16x32xf32>
    %127 = arith.addf %26, %126 : vector<16x32xf32>
    %cst_34 = arith.constant dense<0.000000e+00> : vector<16xf32>
    %128 = vector.multi_reduction <add>, %127, %cst_34 [1] : vector<16x32xf32> to vector<16xf32>
    %129 = vector.shape_cast %128 : vector<16xf32> to vector<16x1xf32>
    %cst_35 = arith.constant 3.200000e+01 : f32
    %130 = vector.broadcast %cst_35 : f32 to vector<16x1xf32>
    %131 = arith.divf %129, %130 : vector<16x1xf32>
    %132 = vector.broadcast %131 : vector<16x1xf32> to vector<16x32xf32>
    %133 = arith.subf %127, %132 : vector<16x32xf32>
    %134 = arith.mulf %133, %133 : vector<16x32xf32>
    %cst_36 = arith.constant dense<0.000000e+00> : vector<16xf32>
    %135 = vector.multi_reduction <add>, %134, %cst_36 [1] : vector<16x32xf32> to vector<16xf32>
    %136 = vector.shape_cast %135 : vector<16xf32> to vector<16x1xf32>
    %cst_37 = arith.constant 3.200000e+01 : f32
    %137 = vector.broadcast %cst_37 : f32 to vector<16x1xf32>
    %138 = arith.divf %136, %137 : vector<16x1xf32>
    %139 = vector.broadcast %131 : vector<16x1xf32> to vector<16x32xf32>
    %140 = arith.subf %127, %139 : vector<16x32xf32>
    %cst_38 = arith.constant 9.99999974E-6 : f32
    %141 = vector.broadcast %cst_38 : f32 to vector<16x1xf32>
    %142 = arith.addf %138, %141 : vector<16x1xf32>
    %143 = math.rsqrt %142 : vector<16x1xf32>
    %144 = vector.broadcast %143 : vector<16x1xf32> to vector<16x32xf32>
    %145 = arith.mulf %140, %144 : vector<16x32xf32>
    %146 = vector.broadcast %38 : vector<1x32xf32> to vector<16x32xf32>
    %147 = arith.mulf %145, %146 : vector<16x32xf32>
    %148 = vector.broadcast %39 : vector<1x32xf32> to vector<16x32xf32>
    %149 = arith.addf %147, %148 : vector<16x32xf32>
    %150 = arith.truncf %149 : vector<16x32xf32> to vector<16x32xbf16>
    %cst_39 = arith.constant dense<0.000000e+00> : vector<16x64xf32>
    %151 = tpu.matmul %150, %31, %cst_39 {dimension_numbers = #tpu.dot_dimension_numbers<[1], [0], [0], [1], [0, 0, 1, 1], [], []>} : vector<16x32xbf16>, vector<32x64xbf16>, vector<16x64xf32> -> vector<16x64xf32>
    %152 = vector.broadcast %35 : vector<1x64xf32> to vector<16x64xf32>
    %153 = arith.addf %151, %152 : vector<16x64xf32>
    %cst_40 = arith.constant 5.000000e-01 : f32
    %154 = vector.broadcast %cst_40 : f32 to vector<16x64xf32>
    %155 = arith.mulf %154, %153 : vector<16x64xf32>
    %cst_41 = arith.constant 1.41421354 : f32
    %156 = vector.broadcast %cst_41 : f32 to vector<16x64xf32>
    %157 = arith.divf %153, %156 : vector<16x64xf32>
    %158 = math.erf %157 : vector<16x64xf32>
    %cst_42 = arith.constant 1.000000e+00 : f32
    %159 = vector.broadcast %cst_42 : f32 to vector<16x64xf32>
    %160 = arith.addf %159, %158 : vector<16x64xf32>
    %161 = arith.mulf %155, %160 : vector<16x64xf32>
    %162 = arith.truncf %161 : vector<16x64xf32> to vector<16x64xbf16>
    %cst_43 = arith.constant dense<0.000000e+00> : vector<16x32xf32>
    %163 = tpu.matmul %162, %33, %cst_43 {dimension_numbers = #tpu.dot_dimension_numbers<[1], [0], [0], [1], [0, 0, 1, 1], [], []>} : vector<16x64xbf16>, vector<64x32xbf16>, vector<16x32xf32> -> vector<16x32xf32>
    %164 = vector.broadcast %37 : vector<1x32xf32> to vector<16x32xf32>
    %165 = arith.addf %163, %164 : vector<16x32xf32>
    %166 = arith.addf %149, %165 : vector<16x32xf32>
    %cst_44 = arith.constant dense<0.000000e+00> : vector<16xf32>
    %167 = vector.multi_reduction <add>, %166, %cst_44 [1] : vector<16x32xf32> to vector<16xf32>
    %168 = vector.shape_cast %167 : vector<16xf32> to vector<16x1xf32>
    %cst_45 = arith.constant 3.200000e+01 : f32
    %169 = vector.broadcast %cst_45 : f32 to vector<16x1xf32>
    %170 = arith.divf %168, %169 : vector<16x1xf32>
    %171 = vector.broadcast %170 : vector<16x1xf32> to vector<16x32xf32>
    %172 = arith.subf %166, %171 : vector<16x32xf32>
    %173 = arith.mulf %172, %172 : vector<16x32xf32>
    %cst_46 = arith.constant dense<0.000000e+00> : vector<16xf32>
    %174 = vector.multi_reduction <add>, %173, %cst_46 [1] : vector<16x32xf32> to vector<16xf32>
    %175 = vector.shape_cast %174 : vector<16xf32> to vector<16x1xf32>
    %cst_47 = arith.constant 3.200000e+01 : f32
    %176 = vector.broadcast %cst_47 : f32 to vector<16x1xf32>
    %177 = arith.divf %175, %176 : vector<16x1xf32>
    %178 = vector.broadcast %170 : vector<16x1xf32> to vector<16x32xf32>
    %179 = arith.subf %166, %178 : vector<16x32xf32>
    %cst_48 = arith.constant 9.99999974E-6 : f32
    %180 = vector.broadcast %cst_48 : f32 to vector<16x1xf32>
    %181 = arith.addf %177, %180 : vector<16x1xf32>
    %182 = math.rsqrt %181 : vector<16x1xf32>
    %183 = vector.broadcast %182 : vector<16x1xf32> to vector<16x32xf32>
    %184 = arith.mulf %179, %183 : vector<16x32xf32>
    %185 = vector.broadcast %40 : vector<1x32xf32> to vector<16x32xf32>
    %186 = arith.mulf %184, %185 : vector<16x32xf32>
    %187 = vector.broadcast %41 : vector<1x32xf32> to vector<16x32xf32>
    %188 = arith.addf %186, %187 : vector<16x32xf32>
    %c1 = arith.constant 1 : index
    %c0_49 = arith.constant 0 : index
    %c0_50 = arith.constant 0 : index
    %189 = vector.load %arg2[%c1, %c0_49, %c0_50] : memref<2x32x192xbf16, #tpu.memory_space<vmem>>, vector<1x32x192xbf16>
    %190 = vector.shape_cast %189 : vector<1x32x192xbf16> to vector<32x192xbf16>
    %191 = vector.extract_strided_slice %190 {offsets = [0, 0], sizes = [32, 96], strides = [1, 1]} : vector<32x192xbf16> to vector<32x96xbf16>
    %192 = vector.extract_strided_slice %190 {offsets = [0, 96], sizes = [32, 32], strides = [1, 1]} : vector<32x192xbf16> to vector<32x32xbf16>
    %193 = vector.extract_strided_slice %190 {offsets = [0, 128], sizes = [32, 64], strides = [1, 1]} : vector<32x192xbf16> to vector<32x64xbf16>
    %c1_51 = arith.constant 1 : index
    %c0_52 = arith.constant 0 : index
    %c0_53 = arith.constant 0 : index
    %194 = vector.load %arg3[%c1_51, %c0_52, %c0_53] : memref<2x64x32xbf16, #tpu.memory_space<vmem>>, vector<1x64x32xbf16>
    %195 = vector.shape_cast %194 : vector<1x64x32xbf16> to vector<64x32xbf16>
    %196 = vector.extract_strided_slice %2 {offsets = [6, 0], sizes = [1, 96], strides = [1, 1]} : vector<11x96xf32> to vector<1x96xf32>
    %197 = vector.extract_strided_slice %2 {offsets = [7, 0], sizes = [1, 64], strides = [1, 1]} : vector<11x96xf32> to vector<1x64xf32>
    %198 = vector.extract_strided_slice %2 {offsets = [8, 0], sizes = [1, 32], strides = [1, 1]} : vector<11x96xf32> to vector<1x32xf32>
    %199 = vector.extract_strided_slice %2 {offsets = [8, 32], sizes = [1, 32], strides = [1, 1]} : vector<11x96xf32> to vector<1x32xf32>
    %200 = vector.extract_strided_slice %2 {offsets = [9, 0], sizes = [1, 32], strides = [1, 1]} : vector<11x96xf32> to vector<1x32xf32>
    %201 = vector.extract_strided_slice %2 {offsets = [9, 32], sizes = [1, 32], strides = [1, 1]} : vector<11x96xf32> to vector<1x32xf32>
    %202 = vector.extract_strided_slice %2 {offsets = [10, 0], sizes = [1, 32], strides = [1, 1]} : vector<11x96xf32> to vector<1x32xf32>
    %203 = vector.extract_strided_slice %2 {offsets = [10, 32], sizes = [1, 32], strides = [1, 1]} : vector<11x96xf32> to vector<1x32xf32>
    %204 = arith.truncf %188 : vector<16x32xf32> to vector<16x32xbf16>
    %cst_54 = arith.constant dense<0.000000e+00> : vector<16x96xf32>
    %205 = tpu.matmul %204, %191, %cst_54 {dimension_numbers = #tpu.dot_dimension_numbers<[1], [0], [0], [1], [0, 0, 1, 1], [], []>} : vector<16x32xbf16>, vector<32x96xbf16>, vector<16x96xf32> -> vector<16x96xf32>
    %206 = vector.broadcast %196 : vector<1x96xf32> to vector<16x96xf32>
    %207 = arith.addf %205, %206 : vector<16x96xf32>
    %208 = vector.extract_strided_slice %207 {offsets = [0, 0], sizes = [16, 32], strides = [1, 1]} : vector<16x96xf32> to vector<16x32xf32>
    %cst_55 = arith.constant 0.353553385 : f32
    %209 = vector.broadcast %cst_55 : f32 to vector<16x32xf32>
    %210 = arith.mulf %208, %209 : vector<16x32xf32>
    %211 = arith.truncf %210 : vector<16x32xf32> to vector<16x32xbf16>
    %212 = vector.extract_strided_slice %207 {offsets = [0, 32], sizes = [16, 32], strides = [1, 1]} : vector<16x96xf32> to vector<16x32xf32>
    %213 = arith.truncf %212 : vector<16x32xf32> to vector<16x32xbf16>
    %214 = vector.extract_strided_slice %207 {offsets = [0, 64], sizes = [16, 32], strides = [1, 1]} : vector<16x96xf32> to vector<16x32xf32>
    %215 = arith.truncf %214 : vector<16x32xf32> to vector<16x32xbf16>
    %216 = vector.extract_strided_slice %211 {offsets = [0, 0], sizes = [16, 8], strides = [1, 1]} : vector<16x32xbf16> to vector<16x8xbf16>
    %217 = vector.extract_strided_slice %213 {offsets = [0, 0], sizes = [16, 8], strides = [1, 1]} : vector<16x32xbf16> to vector<16x8xbf16>
    %218 = vector.extract_strided_slice %215 {offsets = [0, 0], sizes = [16, 8], strides = [1, 1]} : vector<16x32xbf16> to vector<16x8xbf16>
    %cst_56 = arith.constant dense<0.000000e+00> : vector<16x16xf32>
    %219 = tpu.matmul %216, %217, %cst_56 {dimension_numbers = #tpu.dot_dimension_numbers<[1], [1], [0], [0], [0, 0, 1, 0], [], []>} : vector<16x8xbf16>, vector<16x8xbf16>, vector<16x16xf32> -> vector<16x16xf32>
    %220 = arith.addf %219, %1 : vector<16x16xf32>
    %cst_57 = arith.constant dense<0xFF800000> : vector<16xf32>
    %221 = vector.multi_reduction <maximumf>, %220, %cst_57 [1] : vector<16x16xf32> to vector<16xf32>
    %222 = vector.shape_cast %221 : vector<16xf32> to vector<16x1xf32>
    %223 = vector.broadcast %222 : vector<16x1xf32> to vector<16x16xf32>
    %224 = arith.subf %220, %223 : vector<16x16xf32>
    %225 = math.exp %224 : vector<16x16xf32>
    %cst_58 = arith.constant dense<0.000000e+00> : vector<16xf32>
    %226 = vector.multi_reduction <add>, %225, %cst_58 [1] : vector<16x16xf32> to vector<16xf32>
    %227 = vector.shape_cast %226 : vector<16xf32> to vector<16x1xf32>
    %228 = tpu.reciprocal %227 {approx = true} : vector<16x1xf32> -> vector<16x1xf32>
    %229 = vector.broadcast %228 : vector<16x1xf32> to vector<16x16xf32>
    %230 = arith.mulf %225, %229 : vector<16x16xf32>
    %231 = arith.truncf %230 : vector<16x16xf32> to vector<16x16xbf16>
    %cst_59 = arith.constant dense<0.000000e+00> : vector<16x8xf32>
    %232 = tpu.matmul %231, %218, %cst_59 {dimension_numbers = #tpu.dot_dimension_numbers<[1], [0], [0], [1], [0, 0, 1, 1], [], []>} : vector<16x16xbf16>, vector<16x8xbf16>, vector<16x8xf32> -> vector<16x8xf32>
    %233 = vector.extract_strided_slice %211 {offsets = [0, 8], sizes = [16, 8], strides = [1, 1]} : vector<16x32xbf16> to vector<16x8xbf16>
    %234 = vector.extract_strided_slice %213 {offsets = [0, 8], sizes = [16, 8], strides = [1, 1]} : vector<16x32xbf16> to vector<16x8xbf16>
    %235 = vector.extract_strided_slice %215 {offsets = [0, 8], sizes = [16, 8], strides = [1, 1]} : vector<16x32xbf16> to vector<16x8xbf16>
    %cst_60 = arith.constant dense<0.000000e+00> : vector<16x16xf32>
    %236 = tpu.matmul %233, %234, %cst_60 {dimension_numbers = #tpu.dot_dimension_numbers<[1], [1], [0], [0], [0, 0, 1, 0], [], []>} : vector<16x8xbf16>, vector<16x8xbf16>, vector<16x16xf32> -> vector<16x16xf32>
    %237 = arith.addf %236, %1 : vector<16x16xf32>
    %cst_61 = arith.constant dense<0xFF800000> : vector<16xf32>
    %238 = vector.multi_reduction <maximumf>, %237, %cst_61 [1] : vector<16x16xf32> to vector<16xf32>
    %239 = vector.shape_cast %238 : vector<16xf32> to vector<16x1xf32>
    %240 = vector.broadcast %239 : vector<16x1xf32> to vector<16x16xf32>
    %241 = arith.subf %237, %240 : vector<16x16xf32>
    %242 = math.exp %241 : vector<16x16xf32>
    %cst_62 = arith.constant dense<0.000000e+00> : vector<16xf32>
    %243 = vector.multi_reduction <add>, %242, %cst_62 [1] : vector<16x16xf32> to vector<16xf32>
    %244 = vector.shape_cast %243 : vector<16xf32> to vector<16x1xf32>
    %245 = tpu.reciprocal %244 {approx = true} : vector<16x1xf32> -> vector<16x1xf32>
    %246 = vector.broadcast %245 : vector<16x1xf32> to vector<16x16xf32>
    %247 = arith.mulf %242, %246 : vector<16x16xf32>
    %248 = arith.truncf %247 : vector<16x16xf32> to vector<16x16xbf16>
    %cst_63 = arith.constant dense<0.000000e+00> : vector<16x8xf32>
    %249 = tpu.matmul %248, %235, %cst_63 {dimension_numbers = #tpu.dot_dimension_numbers<[1], [0], [0], [1], [0, 0, 1, 1], [], []>} : vector<16x16xbf16>, vector<16x8xbf16>, vector<16x8xf32> -> vector<16x8xf32>
    %250 = vector.extract_strided_slice %211 {offsets = [0, 16], sizes = [16, 8], strides = [1, 1]} : vector<16x32xbf16> to vector<16x8xbf16>
    %251 = vector.extract_strided_slice %213 {offsets = [0, 16], sizes = [16, 8], strides = [1, 1]} : vector<16x32xbf16> to vector<16x8xbf16>
    %252 = vector.extract_strided_slice %215 {offsets = [0, 16], sizes = [16, 8], strides = [1, 1]} : vector<16x32xbf16> to vector<16x8xbf16>
    %cst_64 = arith.constant dense<0.000000e+00> : vector<16x16xf32>
    %253 = tpu.matmul %250, %251, %cst_64 {dimension_numbers = #tpu.dot_dimension_numbers<[1], [1], [0], [0], [0, 0, 1, 0], [], []>} : vector<16x8xbf16>, vector<16x8xbf16>, vector<16x16xf32> -> vector<16x16xf32>
    %254 = arith.addf %253, %1 : vector<16x16xf32>
    %cst_65 = arith.constant dense<0xFF800000> : vector<16xf32>
    %255 = vector.multi_reduction <maximumf>, %254, %cst_65 [1] : vector<16x16xf32> to vector<16xf32>
    %256 = vector.shape_cast %255 : vector<16xf32> to vector<16x1xf32>
    %257 = vector.broadcast %256 : vector<16x1xf32> to vector<16x16xf32>
    %258 = arith.subf %254, %257 : vector<16x16xf32>
    %259 = math.exp %258 : vector<16x16xf32>
    %cst_66 = arith.constant dense<0.000000e+00> : vector<16xf32>
    %260 = vector.multi_reduction <add>, %259, %cst_66 [1] : vector<16x16xf32> to vector<16xf32>
    %261 = vector.shape_cast %260 : vector<16xf32> to vector<16x1xf32>
    %262 = tpu.reciprocal %261 {approx = true} : vector<16x1xf32> -> vector<16x1xf32>
    %263 = vector.broadcast %262 : vector<16x1xf32> to vector<16x16xf32>
    %264 = arith.mulf %259, %263 : vector<16x16xf32>
    %265 = arith.truncf %264 : vector<16x16xf32> to vector<16x16xbf16>
    %cst_67 = arith.constant dense<0.000000e+00> : vector<16x8xf32>
    %266 = tpu.matmul %265, %252, %cst_67 {dimension_numbers = #tpu.dot_dimension_numbers<[1], [0], [0], [1], [0, 0, 1, 1], [], []>} : vector<16x16xbf16>, vector<16x8xbf16>, vector<16x8xf32> -> vector<16x8xf32>
    %267 = vector.extract_strided_slice %211 {offsets = [0, 24], sizes = [16, 8], strides = [1, 1]} : vector<16x32xbf16> to vector<16x8xbf16>
    %268 = vector.extract_strided_slice %213 {offsets = [0, 24], sizes = [16, 8], strides = [1, 1]} : vector<16x32xbf16> to vector<16x8xbf16>
    %269 = vector.extract_strided_slice %215 {offsets = [0, 24], sizes = [16, 8], strides = [1, 1]} : vector<16x32xbf16> to vector<16x8xbf16>
    %cst_68 = arith.constant dense<0.000000e+00> : vector<16x16xf32>
    %270 = tpu.matmul %267, %268, %cst_68 {dimension_numbers = #tpu.dot_dimension_numbers<[1], [1], [0], [0], [0, 0, 1, 0], [], []>} : vector<16x8xbf16>, vector<16x8xbf16>, vector<16x16xf32> -> vector<16x16xf32>
    %271 = arith.addf %270, %1 : vector<16x16xf32>
    %cst_69 = arith.constant dense<0xFF800000> : vector<16xf32>
    %272 = vector.multi_reduction <maximumf>, %271, %cst_69 [1] : vector<16x16xf32> to vector<16xf32>
    %273 = vector.shape_cast %272 : vector<16xf32> to vector<16x1xf32>
    %274 = vector.broadcast %273 : vector<16x1xf32> to vector<16x16xf32>
    %275 = arith.subf %271, %274 : vector<16x16xf32>
    %276 = math.exp %275 : vector<16x16xf32>
    %cst_70 = arith.constant dense<0.000000e+00> : vector<16xf32>
    %277 = vector.multi_reduction <add>, %276, %cst_70 [1] : vector<16x16xf32> to vector<16xf32>
    %278 = vector.shape_cast %277 : vector<16xf32> to vector<16x1xf32>
    %279 = tpu.reciprocal %278 {approx = true} : vector<16x1xf32> -> vector<16x1xf32>
    %280 = vector.broadcast %279 : vector<16x1xf32> to vector<16x16xf32>
    %281 = arith.mulf %276, %280 : vector<16x16xf32>
    %282 = arith.truncf %281 : vector<16x16xf32> to vector<16x16xbf16>
    %cst_71 = arith.constant dense<0.000000e+00> : vector<16x8xf32>
    %283 = tpu.matmul %282, %269, %cst_71 {dimension_numbers = #tpu.dot_dimension_numbers<[1], [0], [0], [1], [0, 0, 1, 1], [], []>} : vector<16x16xbf16>, vector<16x8xbf16>, vector<16x8xf32> -> vector<16x8xf32>
    %284 = tpu.concatenate %232, %249, %266, %283 in 1 : vector<16x8xf32>, vector<16x8xf32>, vector<16x8xf32>, vector<16x8xf32> -> vector<16x32xf32>
    %285 = arith.truncf %284 : vector<16x32xf32> to vector<16x32xbf16>
    %cst_72 = arith.constant dense<0.000000e+00> : vector<16x32xf32>
    %286 = tpu.matmul %285, %192, %cst_72 {dimension_numbers = #tpu.dot_dimension_numbers<[1], [0], [0], [1], [0, 0, 1, 1], [], []>} : vector<16x32xbf16>, vector<32x32xbf16>, vector<16x32xf32> -> vector<16x32xf32>
    %287 = vector.broadcast %198 : vector<1x32xf32> to vector<16x32xf32>
    %288 = arith.addf %286, %287 : vector<16x32xf32>
    %289 = arith.addf %188, %288 : vector<16x32xf32>
    %cst_73 = arith.constant dense<0.000000e+00> : vector<16xf32>
    %290 = vector.multi_reduction <add>, %289, %cst_73 [1] : vector<16x32xf32> to vector<16xf32>
    %291 = vector.shape_cast %290 : vector<16xf32> to vector<16x1xf32>
    %cst_74 = arith.constant 3.200000e+01 : f32
    %292 = vector.broadcast %cst_74 : f32 to vector<16x1xf32>
    %293 = arith.divf %291, %292 : vector<16x1xf32>
    %294 = vector.broadcast %293 : vector<16x1xf32> to vector<16x32xf32>
    %295 = arith.subf %289, %294 : vector<16x32xf32>
    %296 = arith.mulf %295, %295 : vector<16x32xf32>
    %cst_75 = arith.constant dense<0.000000e+00> : vector<16xf32>
    %297 = vector.multi_reduction <add>, %296, %cst_75 [1] : vector<16x32xf32> to vector<16xf32>
    %298 = vector.shape_cast %297 : vector<16xf32> to vector<16x1xf32>
    %cst_76 = arith.constant 3.200000e+01 : f32
    %299 = vector.broadcast %cst_76 : f32 to vector<16x1xf32>
    %300 = arith.divf %298, %299 : vector<16x1xf32>
    %301 = vector.broadcast %293 : vector<16x1xf32> to vector<16x32xf32>
    %302 = arith.subf %289, %301 : vector<16x32xf32>
    %cst_77 = arith.constant 9.99999974E-6 : f32
    %303 = vector.broadcast %cst_77 : f32 to vector<16x1xf32>
    %304 = arith.addf %300, %303 : vector<16x1xf32>
    %305 = math.rsqrt %304 : vector<16x1xf32>
    %306 = vector.broadcast %305 : vector<16x1xf32> to vector<16x32xf32>
    %307 = arith.mulf %302, %306 : vector<16x32xf32>
    %308 = vector.broadcast %200 : vector<1x32xf32> to vector<16x32xf32>
    %309 = arith.mulf %307, %308 : vector<16x32xf32>
    %310 = vector.broadcast %201 : vector<1x32xf32> to vector<16x32xf32>
    %311 = arith.addf %309, %310 : vector<16x32xf32>
    %312 = arith.truncf %311 : vector<16x32xf32> to vector<16x32xbf16>
    %cst_78 = arith.constant dense<0.000000e+00> : vector<16x64xf32>
    %313 = tpu.matmul %312, %193, %cst_78 {dimension_numbers = #tpu.dot_dimension_numbers<[1], [0], [0], [1], [0, 0, 1, 1], [], []>} : vector<16x32xbf16>, vector<32x64xbf16>, vector<16x64xf32> -> vector<16x64xf32>
    %314 = vector.broadcast %197 : vector<1x64xf32> to vector<16x64xf32>
    %315 = arith.addf %313, %314 : vector<16x64xf32>
    %cst_79 = arith.constant 5.000000e-01 : f32
    %316 = vector.broadcast %cst_79 : f32 to vector<16x64xf32>
    %317 = arith.mulf %316, %315 : vector<16x64xf32>
    %cst_80 = arith.constant 1.41421354 : f32
    %318 = vector.broadcast %cst_80 : f32 to vector<16x64xf32>
    %319 = arith.divf %315, %318 : vector<16x64xf32>
    %320 = math.erf %319 : vector<16x64xf32>
    %cst_81 = arith.constant 1.000000e+00 : f32
    %321 = vector.broadcast %cst_81 : f32 to vector<16x64xf32>
    %322 = arith.addf %321, %320 : vector<16x64xf32>
    %323 = arith.mulf %317, %322 : vector<16x64xf32>
    %324 = arith.truncf %323 : vector<16x64xf32> to vector<16x64xbf16>
    %cst_82 = arith.constant dense<0.000000e+00> : vector<16x32xf32>
    %325 = tpu.matmul %324, %195, %cst_82 {dimension_numbers = #tpu.dot_dimension_numbers<[1], [0], [0], [1], [0, 0, 1, 1], [], []>} : vector<16x64xbf16>, vector<64x32xbf16>, vector<16x32xf32> -> vector<16x32xf32>
    %326 = vector.broadcast %199 : vector<1x32xf32> to vector<16x32xf32>
    %327 = arith.addf %325, %326 : vector<16x32xf32>
    %328 = arith.addf %311, %327 : vector<16x32xf32>
    %cst_83 = arith.constant dense<0.000000e+00> : vector<16xf32>
    %329 = vector.multi_reduction <add>, %328, %cst_83 [1] : vector<16x32xf32> to vector<16xf32>
    %330 = vector.shape_cast %329 : vector<16xf32> to vector<16x1xf32>
    %cst_84 = arith.constant 3.200000e+01 : f32
    %331 = vector.broadcast %cst_84 : f32 to vector<16x1xf32>
    %332 = arith.divf %330, %331 : vector<16x1xf32>
    %333 = vector.broadcast %332 : vector<16x1xf32> to vector<16x32xf32>
    %334 = arith.subf %328, %333 : vector<16x32xf32>
    %335 = arith.mulf %334, %334 : vector<16x32xf32>
    %cst_85 = arith.constant dense<0.000000e+00> : vector<16xf32>
    %336 = vector.multi_reduction <add>, %335, %cst_85 [1] : vector<16x32xf32> to vector<16xf32>
    %337 = vector.shape_cast %336 : vector<16xf32> to vector<16x1xf32>
    %cst_86 = arith.constant 3.200000e+01 : f32
    %338 = vector.broadcast %cst_86 : f32 to vector<16x1xf32>
    %339 = arith.divf %337, %338 : vector<16x1xf32>
    %340 = vector.broadcast %332 : vector<16x1xf32> to vector<16x32xf32>
    %341 = arith.subf %328, %340 : vector<16x32xf32>
    %cst_87 = arith.constant 9.99999974E-6 : f32
    %342 = vector.broadcast %cst_87 : f32 to vector<16x1xf32>
    %343 = arith.addf %339, %342 : vector<16x1xf32>
    %344 = math.rsqrt %343 : vector<16x1xf32>
    %345 = vector.broadcast %344 : vector<16x1xf32> to vector<16x32xf32>
    %346 = arith.mulf %341, %345 : vector<16x32xf32>
    %347 = vector.broadcast %202 : vector<1x32xf32> to vector<16x32xf32>
    %348 = arith.mulf %346, %347 : vector<16x32xf32>
    %349 = vector.broadcast %203 : vector<1x32xf32> to vector<16x32xf32>
    %350 = arith.addf %348, %349 : vector<16x32xf32>
    %c0_88 = arith.constant 0 : index
    %c0_89 = arith.constant 0 : index
    %351 = vector.load %arg5[%c0_88, %c0_89] : memref<16x32xf32, #tpu.memory_space<vmem>>, vector<16x32xf32>
    tpu.vector_store %arg5[%c0_88, %c0_89], %350 {strides = array<i32>} : memref<16x32xf32, #tpu.memory_space<vmem>>, vector<16x32xf32>,
    return
  }
}

</mosaic_0001>

<bundles_post_ra>
// kernel: tpu_custom_call.1
= control target key start
LH: loop header
LB: loop body
LE: loop exit
PB: predicated region body
PF: predicated region fallthrough
CT: control target
= control target key end

     0   :  { %10 = vsyncpa [#allocation3], 0  ;;  %s2232_s0 = inlined_call_operand.vmem [shape: f32[16,32], index: 0, kind: input, shape index: {}]   ;;  %s2233_s1 = inlined_call_operand.vmem [shape: f32[16,16], index: 1, kind: input, shape index: {}]   ;;  %s2234_s2 = inlined_call_operand.vmem [shape: bf16[2,32,192], index: 2, kind: input, shape index: {}]   ;;  %s2235_s3 = inlined_call_operand.vmem [shape: bf16[2,64,32], index: 3, kind: input, shape index: {}]   ;;  %s2236_s4 = inlined_call_operand.hbm [shape: f32[11,96], index: 4, kind: input, shape index: {}]   ;;  %s2237_s5 = inlined_call_operand.hbm [shape: f32[16,32], index: 5, kind: output, shape index: {}]  }
   0x1   :  { %11 = vsyncpa [#allocation4], 0  ;;  %s24_s20 = sshll.u32 %s2236_s4, 4  ;;  %s1760_s21 = smov [#allocation2]   ;;  %s25_s20 = int_to_ptr.hbm [resolvable:$true] %s24_s20 }
   0x2   :  { %s26_s22 = sshll.u32 %s1760_s21, 4  ;;  %s1761_s23 = smov 128   ;;  %s27_s22 = int_to_ptr.vmem [resolvable:$true] %s26_s22 }
   0x3   :  { %s1762_s24 = smov 8  }
   0x4   :  { %32 = dma.hbm_to_vmem [thread:$0]  %s25_s20, 256, %s27_s22, [#allocation3], %s1761_s23, %s1761_s23, %s1762_s24  }
   0x5   :  { %1756 = dma.done.wait [#allocation3], 256  }
   0x6   :  { %1757 = vsyncadd [#allocation3], 4294967040  ;;  %vm44_vm0 = vcmask 261120   ;;  %v38_v0 = vld [vmem:[%s2232_s0] sm:$0xff]  ;;  %v39_v2 = vld [vmem:[%s2232_s0 + $0x8] sm:$0xff]  ;;  %v1763_v4 = vmov 32.0  }
   0x7   :  { %v45_v1 = vsel %vm44_vm0, %v38_v0, 0.0  ;;  %v48_v3 = vsel %vm44_vm0, %v39_v2, 0.0  ;;  %1611 = vrcp.f32 %v1763_v4  ;;  %v1824_v7 = vld [vmem:[#allocation2] sm:$0xff]  ;;  %s1764_s28 = smov 96   ;;  %v1447_v23 = vld [vmem:[%s2234_s2 + $0x10] sm:$0xf] }
   0x8   :  { %46 = vadd.xlane.f32.xlu0 %v45_v1  ;;  %v96_v8 = vperm.slane %v1824_v7, 0  ;;  %v1548_v24 = vld [vmem:[%s2234_s2 + $0x14] sm:$0xf0]  ;;  %v1443_v28 = vld [vmem:[%s2234_s2] sm:$0xf]  ;;  %v118_v57 = vperm.slane %v1824_v7, 1 }
   0x9   :  { %v1840_v25 = vor.u32 %v1548_v24, %v1447_v23  ;;  %v1546_v29 = vld [vmem:[%s2234_s2 + $0x4] sm:$0xf0]  ;;  %s1765_s11 = smov 88   ;;  %s1766_s12 = smov 120   ;;  %vm166_vm8 = vcmask 64512   ;;  %v1886_v23 = vld [vmem:[%s2233_s1] sm:$0xff] }
   0xa   :  { %100 = vrot.lane.b32.xlu2 %v96_v8, %s1764_s28  ;;  %v1850_v30 = vor.u32 %v1546_v29, %v1443_v28  ;;  %s1767_s13 = smov 72   ;;  %s1768_s14 = smov 112   ;;  %vm187_vm9 = vcmask 130048   ;;  %v1893_v28 = vld [vmem:[%s2233_s1 + $0x8] sm:$0xff]  ;;  %vm460_vm10 = vcmask 195584  }
   0xb   :  { %140 = vmatpush.bf16.msra.mxu0 %v1840_v25  ;;  %s1769_s15 = smov 104   ;;  %s1770_s16 = smov 80  }
   0xc   :  { %s1771_s1 = smov 64   ;;  %s1772_s21 = smov 56  }
   0xd   :  { %v1612_v5 = vpop.eup %1611  ;;  %s1773_s22 = smov 40   ;;  %s1774_s25 = smov 48  }
   0xe   :  { %v52_v6 = vmul.f32 32.0, %v1612_v5  ;;  %vm56_vm1 = vweird.f32 %v1612_v5  ;;  %s1775_s26 = smov 32   ;;  %s1776_s4 = smov 16  }
   0xf   :  { %141 = vmatpush.bf16.msra.mxu0 %v1850_v30  ;;  %s1777_s27 = smov 24   ;;  %s1428_s7 = sshll.u32 %s2237_s5, 4  ;;  %s1429_s7 = int_to_ptr.hbm [resolvable:$true] %s1428_s7 }
  0x10   :  { %49 = vadd.xlane.f32.xlu0 %v48_v3  ;;  %v53_v9 = vsub.f32 1.0, %v52_v6 }
  0x12   :  { %v54_v10 = vmul.f32 %v1612_v5, %v53_v9 }
  0x14   :  { %v55_v11 = vadd.f32 %v1612_v5, %v54_v10 }
  0x16   :  { %v1828_v12 = vsel %vm56_vm1, %v1612_v5, %v55_v11 }
  0x64   :  { %v101_v52 = vpop.permute.xlu2 %100 }
  0x7b   :  { %v47_v13 = vpop.xlane.xlu0 %46 }
  0x7c   :  { %v58_v14 = vmul.f32 %v1828_v12, %v47_v13 }
  0x7e   :  { %v60_v15 = vsub.f32 %v38_v0, %v58_v14 }
  0x80   :  { %v62_v16 = vmul.f32 %v60_v15, %v60_v15 }
  0x82   :  { %v64_v17 = vsel %vm44_vm0, %v62_v16, 0.0 }
  0x83   :  { %65 = vadd.xlane.f32.xlu1 %v64_v17  ;;  %v50_v18 = vpop.xlane.xlu0 %49 }
  0x84   :  { %v59_v19 = vmul.f32 %v1828_v12, %v50_v18 }
  0x86   :  { %v61_v20 = vsub.f32 %v39_v2, %v59_v19 }
  0x88   :  { %v63_v21 = vmul.f32 %v61_v20, %v61_v20 }
  0x8a   :  { %v67_v22 = vsel %vm44_vm0, %v63_v21, 0.0 }
  0x8b   :  { %68 = vadd.xlane.f32.xlu1 %v67_v22 }
  0xf6   :  { %v66_v26 = vpop.xlane.xlu1 %65 }
  0xf7   :  { %v70_v27 = vmul.f32 %v66_v26, %v1828_v12 }
  0xf9   :  { %v72_v31 = vadd.f32 1e-05, %v70_v27 }
  0xfb   :  { %1613 = vrsqrt.f32 %v72_v31  ;;  %vm80_vm3 = vweird.f32 %v72_v31 }
  0xfe   :  { %v69_v32 = vpop.xlane.xlu1 %68 }
  0xff   :  { %v71_v33 = vmul.f32 %v69_v32, %v1828_v12 }
 0x101   :  { %v1614_v34 = vpop.eup %1613  ;;  %v73_v35 = vadd.f32 1e-05, %v71_v33 }
 0x102   :  { %v75_v36 = vmul.f32 %v1614_v34, %v72_v31  ;;  %vm81_vm2 = vweird.f32 %v1614_v34 }
 0x103   :  { %1615 = vrsqrt.f32 %v73_v35  ;;  %vm82_vm4 = vmor %vm80_vm3, %vm81_vm2  ;;  %vm90_vm6 = vweird.f32 %v73_v35 }
 0x104   :  { %v76_v37 = vmul.f32 %v1614_v34, %v75_v36 }
 0x106   :  { %v77_v38 = vmul.f32 0.5, %v76_v37 }
 0x108   :  { %v78_v39 = vsub.f32 1.5, %v77_v38 }
 0x109   :  { %v1616_v40 = vpop.eup %1615 }
 0x10a   :  { %v79_v41 = vmul.f32 %v1614_v34, %v78_v39  ;;  %v85_v42 = vmul.f32 %v1616_v40, %v73_v35  ;;  %vm91_vm5 = vweird.f32 %v1616_v40 }
 0x10b   :  { %vm92_vm7 = vmor %vm90_vm6, %vm91_vm5 }
 0x10c   :  { %v86_v43 = vmul.f32 %v1616_v40, %v85_v42  ;;  %v83_v45 = vsel %vm82_vm4, %v1614_v34, %v79_v41 }
 0x10d   :  { %v94_v47 = vmul.f32 %v83_v45, %v60_v15 }
 0x10e   :  { %v87_v44 = vmul.f32 0.5, %v86_v43 }
 0x10f   :  { %v97_v51 = vmul.f32 %v96_v8, %v94_v47 }
 0x110   :  { %v88_v46 = vsub.f32 1.5, %v87_v44 }
 0x111   :  { %v1854_v54 = vadd.f32 %v101_v52, %v97_v51 }
 0x112   :  { %v89_v48 = vmul.f32 %v1616_v40, %v88_v46 }
 0x114   :  { %v93_v49 = vsel %vm92_vm7, %v1616_v40, %v89_v48 }
 0x115   :  { %v95_v50 = vmul.f32 %v93_v49, %v61_v20 }
 0x117   :  { %v98_v53 = vmul.f32 %v96_v8, %v95_v50 }
 0x119   :  { %v1856_v55 = vadd.f32 %v101_v52, %v98_v53 }
 0x11b   :  { %v117_v56 = vpack.c.bf16 %v1856_v55, %v1854_v54 }
 0x11d   :  { %1449 = vmatmul.msk.bf16.vlgmr.msra.gmra.mxu0 %vm44_vm0, %v117_v56 }
 0x19a   :  { %v143_v58 = vpop.f32.mrf.mxu0 }
 0x19b   :  { %v144_v59 = vadd.f32 %v143_v58, %v118_v57 }
 0x19d   :  { %v148_v60 = vmul.f32 0.35355338, %v144_v59  ;;  %v152_v62 = vpack.c.bf16 %v144_v59, %v144_v59 }
 0x19f   :  { %v150_v0 = vpack.c.bf16 %v148_v60, %v148_v60  ;;  %v161_v3 = vunpack.c.l.b16 %v152_v62 }
 0x1a1   :  { %v156_v6 = vunpack.c.l.b16 %v150_v0 }
 0x1a2   :  { %v145_v61 = vpop.f32.mrf.mxu0 }
 0x1a3   :  { %v146_v63 = vadd.f32 %v145_v61, %v118_v57 }
 0x1a5   :  { %v149_v1 = vmul.f32 0.35355338, %v146_v63  ;;  %v153_v2 = vpack.c.bf16 %v146_v63, %v146_v63 }
 0x1a7   :  { %v151_v4 = vpack.c.bf16 %v149_v1, %v149_v1  ;;  %v162_v5 = vunpack.c.l.b16 %v153_v2 }
 0x1a9   :  { %v157_v8 = vunpack.c.l.b16 %v151_v4  ;;  %v1862_v9 = vpack.c.b16 %v162_v5, %v161_v3 }
 0x1ab   :  { %v158_v10 = vpack.c.b16 %v157_v8, %v156_v6  ;;  %233 = vrot.lane.b32.xlu0 %v1862_v9, %s1765_s11  ;;  %164 = vrot.lane.b32.xlu2 %v1862_v9, %s1764_s28 }
 0x1ad   :  { %231 = vrot.lane.b32.xlu1 %v158_v10, %s1766_s12 }
 0x1b3   :  { %367 = vrot.lane.b32.xlu2 %v1862_v9, %s1767_s13  ;;  %298 = vrot.lane.b32.xlu0 %v158_v10, %s1768_s14 }
 0x1bb   :  { %365 = vrot.lane.b32.xlu2 %v158_v10, %s1769_s15 }
 0x1c3   :  { %300 = vrot.lane.b32.xlu2 %v1862_v9, %s1770_s16 }
 0x205   :  { %v165_v11 = vpop.permute.xlu2 %164 }
 0x206   :  { %v171_v13 = vsel %vm166_vm8, %v165_v11, 0 }
 0x207   :  { %180 = vmatpush.bf16.xpose.msra.mxu1 %v171_v13 }
 0x20d   :  { %v368_v14 = vpop.permute.xlu2 %367 }
 0x20e   :  { %1450 = vmatmul.msk.bf16.vlgmr.msra.gmra.mxu1 %vm166_vm8, %v158_v10  ;;  %v373_v20 = vsel %vm166_vm8, %v368_v14, 0 }
 0x215   :  { %v366_v15 = vpop.permute.xlu2 %365 }
 0x21d   :  { %v234_v16 = vpop.permute.xlu0 %233  ;;  %v301_v17 = vpop.permute.xlu2 %300 }
 0x21e   :  { %v239_v18 = vsel %vm166_vm8, %v234_v16, 0  ;;  %v306_v19 = vsel %vm166_vm8, %v301_v17, 0 }
 0x21f   :  { %248 = vmatpush.bf16.xpose.msra.mxu3 %v239_v18  ;;  %315 = vmatpush.bf16.xpose.msrb.mxu0 %v306_v19  ;;  %v232_v21 = vpop.permute.xlu1 %231 }
 0x225   :  { %v299_v22 = vpop.permute.xlu0 %298 }
 0x226   :  { %1452 = vmatmul.msk.bf16.vlgmr.msra.gmra.mxu3 %vm166_vm8, %v232_v21  ;;  %1454 = vmatmul.msk.bf16.vlgmr.msrb.gmra.mxu0 %vm166_vm8, %v299_v22 }
 0x227   :  { %382 = vmatpush.bf16.xpose.msrb.mxu3 %v373_v20 }
 0x236   :  { %1456 = vmatmul.msk.bf16.vlgmr.msrb.gmra.mxu3 %vm166_vm8, %v366_v15 }
 0x28b   :  { %v182_v24 = vpop.f32.mrf.mxu1 }
 0x28c   :  { %v183_v26 = vadd.f32 %v182_v24, %v1886_v23 }
 0x28e   :  { %v188_v27 = vsel %vm187_vm9, %v183_v26, -inf }
 0x28f   :  { %189 = vmax.xlane.f32.xlu2 %v188_v27 }
 0x293   :  { %v184_v29 = vpop.f32.mrf.mxu1 }
 0x294   :  { %v185_v31 = vadd.f32 %v184_v29, %v1893_v28 }
 0x296   :  { %v191_v32 = vsel %vm187_vm9, %v185_v31, -inf }
 0x297   :  { %192 = vmax.xlane.f32.xlu1 %v191_v32 }
 0x2a3   :  { %v317_v33 = vpop.f32.mrf.mxu0 }
 0x2a4   :  { %v318_v43 = vadd.f32 %v317_v33, %v1886_v23 }
 0x2a6   :  { %v322_v47 = vsel %vm187_vm9, %v318_v43, -inf }
 0x2a9   :  { %v250_v34 = vpop.f32.mrf.mxu3 }
 0x2aa   :  { %v251_v35 = vadd.f32 %v250_v34, %v1886_v23 }
 0x2ab   :  { %v319_v36 = vpop.f32.mrf.mxu0 }
 0x2ac   :  { %v320_v37 = vadd.f32 %v319_v36, %v1893_v28  ;;  %v255_v38 = vsel %vm187_vm9, %v251_v35, -inf }
 0x2ad   :  { %256 = vmax.xlane.f32.xlu0 %v255_v38 }
 0x2ae   :  { %v325_v39 = vsel %vm187_vm9, %v320_v37, -inf }
 0x2af   :  { %326 = vmax.xlane.f32.xlu1 %v325_v39 }
 0x2b1   :  { %v252_v40 = vpop.f32.mrf.mxu3 }
 0x2b2   :  { %v253_v41 = vadd.f32 %v252_v40, %v1893_v28 }
 0x2b4   :  { %v258_v42 = vsel %vm187_vm9, %v253_v41, -inf }
 0x2b5   :  { %259 = vmax.xlane.f32.xlu2 %v258_v42 }
 0x2b9   :  { %v384_v44 = vpop.f32.mrf.mxu3 }
 0x2ba   :  { %v385_v45 = vadd.f32 %v384_v44, %v1886_v23 }
 0x2bc   :  { %v389_v46 = vsel %vm187_vm9, %v385_v45, -inf }
 0x2bd   :  { %390 = vmax.xlane.f32.xlu1 %v389_v46  ;;  %323 = vmax.xlane.f32.xlu2 %v322_v47 }
 0x2c1   :  { %v386_v48 = vpop.f32.mrf.mxu3 }
 0x2c2   :  { %v387_v49 = vadd.f32 %v386_v48, %v1893_v28 }
 0x2c4   :  { %v392_v50 = vsel %vm187_vm9, %v387_v49, -inf }
 0x2c5   :  { %393 = vmax.xlane.f32.xlu0 %v392_v50 }
 0x2d6   :  { %211 = vrot.lane.b32.xlu1 %v1862_v9, %s1771_s1 }
 0x2d9   :  { %278 = vrot.lane.b32.xlu0 %v1862_v9, %s1772_s21 }
 0x302   :  { %v190_v51 = vpop.xlane.xlu2 %189 }
 0x303   :  { %v194_v52 = vsub.f32 %v183_v26, %v190_v51 }
 0x305   :  { %v196_v53 = vmul.f32 1.442695, %v194_v52 }
 0x307   :  { %1617 = vpow2.f32 %v196_v53 }
 0x30a   :  { %v193_v56 = vpop.xlane.xlu1 %192 }
 0x30b   :  { %v195_v57 = vsub.f32 %v185_v31, %v193_v56 }
 0x30d   :  { %v1913_v58 = vpop.eup %1617  ;;  %v198_v59 = vmul.f32 1.442695, %v195_v57 }
 0x30e   :  { %v200_v60 = vsel %vm187_vm9, %v1913_v58, 0.0 }
 0x30f   :  { %1619 = vpow2.f32 %v198_v59  ;;  %201 = vadd.xlane.f32.xlu0 %v200_v60 }
 0x315   :  { %v1620_v61 = vpop.eup %1619 }
 0x316   :  { %v203_v62 = vsel %vm187_vm9, %v1620_v61, 0.0 }
 0x317   :  { %204 = vadd.xlane.f32.xlu2 %v203_v62 }
 0x320   :  { %v257_v63 = vpop.xlane.xlu0 %256 }
 0x321   :  { %v261_v0 = vsub.f32 %v251_v35, %v257_v63 }
 0x322   :  { %v327_v1 = vpop.xlane.xlu1 %326 }
 0x323   :  { %v263_v2 = vmul.f32 1.442695, %v261_v0  ;;  %v329_v3 = vsub.f32 %v320_v37, %v327_v1 }
 0x325   :  { %1621 = vpow2.f32 %v263_v2  ;;  %v332_v4 = vmul.f32 1.442695, %v329_v3 }
 0x327   :  { %1623 = vpow2.f32 %v332_v4 }
 0x328   :  { %v260_v5 = vpop.xlane.xlu2 %259 }
 0x329   :  { %v262_v6 = vsub.f32 %v253_v41, %v260_v5 }
 0x32b   :  { %v1622_v8 = vpop.eup %1621  ;;  %v265_v10 = vmul.f32 1.442695, %v262_v6 }
 0x32c   :  { %v267_v11 = vsel %vm187_vm9, %v1622_v8, 0.0 }
 0x32d   :  { %v1919_v13 = vpop.eup %1623  ;;  %1625 = vpow2.f32 %v265_v10  ;;  %268 = vadd.xlane.f32.xlu0 %v267_v11 }
 0x32e   :  { %v337_v14 = vsel %vm187_vm9, %v1919_v13, 0.0 }
 0x32f   :  { %338 = vadd.xlane.f32.xlu2 %v337_v14 }
 0x330   :  { %v391_v15 = vpop.xlane.xlu1 %390  ;;  %v324_v16 = vpop.xlane.xlu2 %323 }
 0x331   :  { %v395_v17 = vsub.f32 %v385_v45, %v391_v15  ;;  %v328_v18 = vsub.f32 %v318_v43, %v324_v16 }
 0x333   :  { %v1626_v19 = vpop.eup %1625  ;;  %v397_v20 = vmul.f32 1.442695, %v395_v17  ;;  %v330_v21 = vmul.f32 1.442695, %v328_v18 }
 0x334   :  { %v270_v22 = vsel %vm187_vm9, %v1626_v19, 0.0 }
 0x335   :  { %1627 = vpow2.f32 %v397_v20 }
 0x336   :  { %1629 = vpow2.f32 %v330_v21 }
 0x337   :  { %271 = vadd.xlane.f32.xlu2 %v270_v22 }
 0x338   :  { %v394_v24 = vpop.xlane.xlu0 %393 }
 0x339   :  { %v396_v26 = vsub.f32 %v387_v49, %v394_v24 }
 0x33b   :  { %v1628_v27 = vpop.eup %1627  ;;  %v399_v29 = vmul.f32 1.442695, %v396_v26 }
 0x33c   :  { %v1630_v31 = vpop.eup %1629  ;;  %v401_v33 = vsel %vm187_vm9, %v1628_v27, 0.0 }
 0x33d   :  { %1631 = vpow2.f32 %v399_v29  ;;  %v334_v32 = vsel %vm187_vm9, %v1630_v31, 0.0 }
 0x33e   :  { %335 = vadd.xlane.f32.xlu1 %v334_v32 }
 0x33f   :  { %402 = vadd.xlane.f32.xlu2 %v401_v33 }
 0x341   :  { %412 = vrot.lane.b32.xlu0 %v1862_v9, %s1773_s22 }
 0x343   :  { %v1632_v34 = vpop.eup %1631 }
 0x344   :  { %v404_v35 = vsel %vm187_vm9, %v1632_v34, 0.0 }
 0x347   :  { %405 = vadd.xlane.f32.xlu2 %v404_v35 }
 0x348   :  { %v212_v36 = vpop.permute.xlu1 %211 }
 0x349   :  { %224 = vmatpush.bf16.msra.mxu2 %v212_v36  ;;  %467 = vrot.lane.b32.xlu0 %v1840_v25, %s1775_s26 }
 0x34b   :  { %v279_v37 = vpop.permute.xlu0 %278 }
 0x34d   :  { %291 = vmatpush.bf16.msrb.mxu2 %v279_v37 }
 0x35f   :  { %345 = vrot.lane.b32.xlu2 %v1862_v9, %s1774_s25 }
 0x382   :  { %v202_v38 = vpop.xlane.xlu0 %201 }
 0x383   :  { %1633 = vrcp.f32 %v202_v38 }
 0x389   :  { %v1634_v40 = vpop.eup %1633 }
 0x38a   :  { %v205_v39 = vpop.xlane.xlu2 %204  ;;  %v208_v42 = vmul.f32 %v1634_v40, %v1913_v58 }
 0x38b   :  { %1635 = vrcp.f32 %v205_v39  ;;  %v464_v39 = vperm.slane %v1824_v7, 3 }
 0x391   :  { %v1636_v41 = vpop.eup %1635 }
 0x392   :  { %v209_v43 = vmul.f32 %v1636_v41, %v1620_v61 }
 0x394   :  { %v210_v44 = vpack.c.bf16 %v209_v43, %v208_v42 }
 0x396   :  { %1451 = vmatmul.msk.bf16.vlgmr.msra.gmra.mxu2 %vm187_vm9, %v210_v44 }
 0x3a0   :  { %v269_v46 = vpop.xlane.xlu0 %268 }
 0x3a1   :  { %1637 = vrcp.f32 %v269_v46 }
 0x3a2   :  { %v339_v45 = vpop.xlane.xlu2 %338 }
 0x3a7   :  { %v1638_v48 = vpop.eup %1637 }
 0x3a8   :  { %v275_v9 = vmul.f32 %v1638_v48, %v1622_v8 }
 0x3aa   :  { %v272_v47 = vpop.xlane.xlu2 %271 }
 0x3ab   :  { %1639 = vrcp.f32 %v272_v47 }
 0x3b1   :  { %v1640_v49 = vpop.eup %1639  ;;  %v336_v53 = vpop.xlane.xlu1 %335 }
 0x3b2   :  { %v276_v50 = vmul.f32 %v1640_v49, %v1626_v19  ;;  %v403_v51 = vpop.xlane.xlu2 %402  ;;  %1641 = vrcp.f32 %v336_v53 }
 0x3b3   :  { %v413_v52 = vpop.permute.xlu0 %412  ;;  %1643 = vrcp.f32 %v339_v45 }
 0x3b4   :  { %425 = vmatpush.bf16.msra.mxu2 %v413_v52  ;;  %v277_v56 = vpack.c.bf16 %v276_v50, %v275_v9  ;;  %1645 = vrcp.f32 %v403_v51 }
 0x3b6   :  { %1453 = vmatmul.msk.bf16.vlgmr.msrb.gmra.mxu2 %vm187_vm9, %v277_v56 }
 0x3b8   :  { %v1642_v58 = vpop.eup %1641 }
 0x3b9   :  { %v1644_v59 = vpop.eup %1643  ;;  %v342_v61 = vmul.f32 %v1642_v58, %v1630_v31  ;;  %v1547_v58 = vld [vmem:[%s2234_s2 + $0x14] sm:$0xf] }
 0x3ba   :  { %v406_v57 = vpop.xlane.xlu2 %405  ;;  %v1646_v60 = vpop.eup %1645  ;;  %v343_v63 = vmul.f32 %v1644_v59, %v1919_v13  ;;  %v1463_v59 = vld [vmem:[%s2234_s2 + $0x18] sm:$0xf0] }
 0x3bb   :  { %1647 = vrcp.f32 %v406_v57  ;;  %v409_v0 = vmul.f32 %v1646_v60, %v1628_v27  ;;  %v468_v25 = vpop.permute.xlu0 %467  ;;  %v1466_v60 = vor.u32 %v1547_v58, %v1463_v59 }
 0x3bc   :  { %v344_v4 = vpack.c.bf16 %v343_v63, %v342_v61  ;;  %480 = vmatpush.bf16.msra.mxu0 %v468_v25  ;;  %v1545_v63 = vld [vmem:[%s2234_s2 + $0x4] sm:$0xf] }
 0x3c1   :  { %v1648_v62 = vpop.eup %1647 }
 0x3c2   :  { %v410_v1 = vmul.f32 %v1648_v62, %v1632_v34  ;;  %v346_v2 = vpop.permute.xlu2 %345 }
 0x3c3   :  { %358 = vmatpush.bf16.msrb.mxu1 %v346_v2 }
 0x3c4   :  { %v411_v3 = vpack.c.bf16 %v410_v1, %v409_v0  ;;  %v1459_v0 = vld [vmem:[%s2234_s2 + $0x8] sm:$0xf0] }
 0x3c5   :  { %v1462_v2 = vor.u32 %v1545_v63, %v1459_v0 }
 0x3c6   :  { %1455 = vmatmul.msk.bf16.vlgmr.msrb.gmra.mxu1 %vm187_vm9, %v344_v4  ;;  %1457 = vmatmul.msk.bf16.vlgmr.msra.gmra.mxu2 %vm187_vm9, %v411_v3 }
 0x3c7   :  { %562 = vmatpush.bf16.msra.mxu1 %v1466_v60  ;;  %v1552_v60 = vld [vmem:[%s2235_s3 + $0x18] sm:$0xff] }
 0x3c8   :  { %702 = vmatpush.bf16.msra.mxu3 %v1552_v60 }
 0x3cb   :  { %563 = vmatpush.bf16.msra.mxu1 %v1462_v2 }
 0x419   :  { %v226_v5 = vpop.f32.mrf.mxu2 }
 0x421   :  { %v228_v6 = vpop.f32.mrf.mxu2 }
 0x439   :  { %v293_v8 = vpop.f32.mrf.mxu2 }
 0x441   :  { %v295_v10 = vpop.f32.mrf.mxu2 }
 0x442   :  { %v1586_v18 = vpack.i.bf16 %v295_v10, %v293_v8 }
 0x443   :  { %v360_v11 = vpop.f32.mrf.mxu1 }
 0x449   :  { %v427_v13 = vpop.f32.mrf.mxu2 }
 0x44b   :  { %v362_v14 = vpop.f32.mrf.mxu1 }
 0x44c   :  { %v1581_v15 = vpack.i.bf16 %v362_v14, %v360_v11 }
 0x44e   :  { %1582 = vrot.lane.b32.xlu0 %v1581_v15, %s1776_s4 }
 0x451   :  { %v429_v16 = vpop.f32.mrf.mxu2 }
 0x452   :  { %v1591_v17 = vpack.i.bf16 %v429_v16, %v427_v13 }
 0x454   :  { %1592 = vrot.lane.b32.xlu2 %v1591_v17, %s1777_s27 }
 0x456   :  { %1587 = vrot.lane.b32.xlu0 %v1586_v18, %s1762_s24 }
 0x45e   :  { %465 = vrot.lane.b32.xlu0 %v1850_v30, %s1775_s26 }
 0x4ae   :  { %v1593_v24 = vpop.permute.xlu2 %1592 }
 0x4af   :  { %v1595_v34 = vunpack.i.h.bf16 %v1593_v24  ;;  %v1594_v30 = vunpack.i.l.bf16 %v1593_v24 }
 0x4c0   :  { %v1583_v19 = vpop.permute.xlu0 %1582 }
 0x4c1   :  { %v1585_v26 = vunpack.i.h.bf16 %v1583_v19  ;;  %v1584_v27 = vunpack.i.l.bf16 %v1583_v19 }
 0x4c8   :  { %v1588_v20 = vpop.permute.xlu0 %1587 }
 0x4c9   :  { %v1590_v21 = vunpack.i.h.bf16 %v1588_v20  ;;  %v1589_v22 = vunpack.i.l.bf16 %v1588_v20 }
 0x4cb   :  { %v457_v29 = vsel %vm166_vm8, %v228_v6, %v1590_v21  ;;  %v456_v31 = vsel %vm166_vm8, %v226_v5, %v1589_v22 }
 0x4cc   :  { %v458_v32 = vsel %vm187_vm9, %v456_v31, %v1584_v27  ;;  %v459_v33 = vsel %vm187_vm9, %v457_v29, %v1585_v26 }
 0x4cd   :  { %v461_v35 = vsel %vm460_vm10, %v458_v32, %v1594_v30  ;;  %v462_v36 = vsel %vm460_vm10, %v459_v33, %v1595_v34  ;;  %v1778_v34 = vmov 1.4142135  }
 0x4ce   :  { %v463_v38 = vpack.c.bf16 %v462_v36, %v461_v35 }
 0x4d0   :  { %v466_v37 = vpop.permute.xlu0 %465 }
 0x4d1   :  { %481 = vmatpush.bf16.msra.mxu0 %v466_v37 }
 0x4d4   :  { %1458 = vmatmul.msk.bf16.vlgmr.msra.gmra.mxu0 %vm44_vm0, %v463_v38 }
 0x551   :  { %v483_v40 = vpop.f32.mrf.mxu0 }
 0x552   :  { %v484_v41 = vadd.f32 %v483_v40, %v464_v39 }
 0x554   :  { %v488_v42 = vadd.f32 %v484_v41, %v1854_v54 }
 0x556   :  { %v490_v43 = vsel %vm44_vm0, %v488_v42, 0.0 }
 0x557   :  { %491 = vadd.xlane.f32.xlu1 %v490_v43 }
 0x559   :  { %v485_v44 = vpop.f32.mrf.mxu0 }
 0x55a   :  { %v486_v45 = vadd.f32 %v485_v44, %v464_v39 }
 0x55c   :  { %v489_v46 = vadd.f32 %v486_v45, %v1856_v55  ;;  %v534_v55 = vperm.slane %v1824_v7, 4 }
 0x55e   :  { %v493_v47 = vsel %vm44_vm0, %v489_v46, 0.0 }
 0x55f   :  { %494 = vadd.xlane.f32.xlu2 %v493_v47 }
 0x5ca   :  { %v492_v48 = vpop.xlane.xlu1 %491 }
 0x5cb   :  { %v496_v49 = vmul.f32 %v492_v48, %v1828_v12 }
 0x5cd   :  { %v498_v9 = vsub.f32 %v488_v42, %v496_v49 }
 0x5cf   :  { %v500_v50 = vmul.f32 %v498_v9, %v498_v9 }
 0x5d1   :  { %v502_v51 = vsel %vm44_vm0, %v500_v50, 0.0 }
 0x5d2   :  { %v495_v52 = vpop.xlane.xlu2 %494  ;;  %503 = vadd.xlane.f32.xlu0 %v502_v51 }
 0x5d3   :  { %v497_v54 = vmul.f32 %v495_v52, %v1828_v12 }
 0x5d5   :  { %v499_v53 = vsub.f32 %v489_v46, %v497_v54 }
 0x5d7   :  { %v501_v56 = vmul.f32 %v499_v53, %v499_v53 }
 0x5d9   :  { %v505_v57 = vsel %vm44_vm0, %v501_v56, 0.0 }
 0x5da   :  { %506 = vadd.xlane.f32.xlu1 %v505_v57 }
 0x5f3   :  { %538 = vrot.lane.b32.xlu1 %v534_v55, %s1764_s28 }
 0x5fb   :  { %691 = vrot.lane.b32.xlu1 %v464_v39, %s1764_s28  ;;  %v544_v39 = vperm.slane %v1824_v7, 2 }
 0x645   :  { %v504_v61 = vpop.xlane.xlu0 %503 }
 0x646   :  { %v508_v62 = vmul.f32 %v504_v61, %v1828_v12 }
 0x648   :  { %v510_v1 = vadd.f32 1e-05, %v508_v62 }
 0x64a   :  { %1649 = vrsqrt.f32 %v510_v1  ;;  %vm518_vm12 = vweird.f32 %v510_v1 }
 0x64d   :  { %v507_v3 = vpop.xlane.xlu1 %506 }
 0x64e   :  { %v509_v4 = vmul.f32 %v507_v3, %v1828_v12  ;;  %v1551_v3 = vld [vmem:[%s2235_s3 + $0x10] sm:$0xff] }
 0x64f   :  { %703 = vmatpush.bf16.msra.mxu3 %v1551_v3 }
 0x650   :  { %v1650_v5 = vpop.eup %1649  ;;  %v511_v6 = vadd.f32 1e-05, %v509_v4 }
 0x651   :  { %v513_v8 = vmul.f32 %v1650_v5, %v510_v1  ;;  %vm519_vm11 = vweird.f32 %v1650_v5 }
 0x652   :  { %1651 = vrsqrt.f32 %v511_v6  ;;  %vm520_vm13 = vmor %vm518_vm12, %vm519_vm11  ;;  %vm528_vm15 = vweird.f32 %v511_v6 }
 0x653   :  { %v514_v10 = vmul.f32 %v1650_v5, %v513_v8  ;;  %1653 = vrcp.f32 %v1778_v34 }
 0x655   :  { %v515_v11 = vmul.f32 0.5, %v514_v10 }
 0x657   :  { %v516_v13 = vsub.f32 1.5, %v515_v11 }
 0x658   :  { %v1652_v14 = vpop.eup %1651 }
 0x659   :  { %v523_v15 = vmul.f32 %v1652_v14, %v511_v6  ;;  %v517_v16 = vmul.f32 %v1650_v5, %v516_v13  ;;  %vm529_vm14 = vweird.f32 %v1652_v14  ;;  %v1654_v30 = vpop.eup %1653  ;;  %v1550_v13 = vld [vmem:[%s2235_s3 + $0x8] sm:$0xff] }
 0x65a   :  { %vm530_vm1 = vmor %vm528_vm15, %vm529_vm14  ;;  %v573_v35 = vmul.f32 1.4142135, %v1654_v30  ;;  %vm577_vm2 = vweird.f32 %v1654_v30  ;;  %704 = vmatpush.bf16.msra.mxu3 %v1550_v13  ;;  %vm694_vm14 = vcmask 523264  }
 0x65b   :  { %v524_v17 = vmul.f32 %v1652_v14, %v523_v15  ;;  %v521_v19 = vsel %vm520_vm13, %v1650_v5, %v517_v16 }
 0x65c   :  { %v532_v21 = vmul.f32 %v521_v19, %v498_v9  ;;  %v574_v36 = vsub.f32 1.0, %v573_v35 }
 0x65d   :  { %v525_v18 = vmul.f32 0.5, %v524_v17 }
 0x65e   :  { %v535_v27 = vmul.f32 %v534_v55, %v532_v21  ;;  %v575_v37 = vmul.f32 %v1654_v30, %v574_v36 }
 0x65f   :  { %v526_v25 = vsub.f32 1.5, %v525_v18 }
 0x660   :  { %v576_v38 = vadd.f32 %v1654_v30, %v575_v37 }
 0x661   :  { %v527_v20 = vmul.f32 %v1652_v14, %v526_v25  ;;  %v1549_v25 = vld [vmem:[%s2235_s3] sm:$0xff] }
 0x662   :  { %v1985_v41 = vsel %vm577_vm2, %v1654_v30, %v576_v38  ;;  %705 = vmatpush.bf16.msra.mxu3 %v1549_v25 }
 0x663   :  { %v531_v22 = vsel %vm530_vm1, %v1652_v14, %v527_v20 }
 0x664   :  { %v533_v24 = vmul.f32 %v531_v22, %v499_v53 }
 0x665   :  { %v539_v26 = vpop.permute.xlu1 %538 }
 0x666   :  { %v536_v29 = vmul.f32 %v534_v55, %v533_v24  ;;  %v1977_v31 = vadd.f32 %v539_v26, %v535_v27 }
 0x668   :  { %v1979_v32 = vadd.f32 %v539_v26, %v536_v29 }
 0x66a   :  { %v543_v33 = vpack.c.bf16 %v1979_v32, %v1977_v31 }
 0x66c   :  { %1467 = vmatmul.msk.bf16.vlgmr.msra.gmra.mxu1 %vm44_vm0, %v543_v33 }
 0x6e9   :  { %v565_v40 = vpop.f32.mrf.mxu1 }
 0x6ea   :  { %v1987_v42 = vadd.f32 %v565_v40, %v544_v39 }
 0x6ec   :  { %v1991_v43 = vmul.f32 %v1985_v41, %v1987_v42  ;;  %v570_v3 = vmul.f32 0.5, %v1987_v42 }
 0x6ee   :  { %v581_v44 = vmul.f32 %v1991_v43, %v1991_v43 }
 0x6f0   :  { %v582_v45 = vmin.f32 %v581_v44, 16.0 }
 0x6f1   :  { %v567_v46 = vpop.f32.mrf.mxu1 }
 0x6f2   :  { %v583_v47 = vmul.f32 2.1237322e-06, %v582_v45  ;;  %v594_v48 = vmul.f32 3.8918573e-05, %v582_v45  ;;  %v1995_v49 = vadd.f32 %v567_v46, %v544_v39 }
 0x6f4   :  { %v584_v9 = vadd.f32 0.00028619796, %v583_v47  ;;  %v595_v50 = vadd.f32 0.001143296, %v594_v48  ;;  %v1999_v51 = vmul.f32 %v1985_v41, %v1995_v49 }
 0x6f6   :  { %v596_v52 = vmul.f32 %v595_v50, %v582_v45  ;;  %v621_v54 = vmul.f32 %v1999_v51, %v1999_v51  ;;  %v585_v53 = vmul.f32 %v584_v9, %v582_v45 }
 0x6f8   :  { %v597_v56 = vadd.f32 0.014752088, %v596_v52  ;;  %v622_v57 = vmin.f32 %v621_v54, 16.0  ;;  %v586_v61 = vadd.f32 0.0036580483, %v585_v53 }
 0x6fa   :  { %v598_v55 = vmul.f32 %v597_v56, %v582_v45  ;;  %v623_v58 = vmul.f32 2.1237322e-06, %v622_v57  ;;  %v634_v59 = vmul.f32 3.8918573e-05, %v622_v57  ;;  %v587_v5 = vmul.f32 %v586_v61, %v582_v45 }
 0x6fc   :  { %v599_v62 = vadd.f32 0.112945676, %v598_v55  ;;  %v624_v63 = vadd.f32 0.00028619796, %v623_v58  ;;  %v635_v0 = vadd.f32 0.001143296, %v634_v59 }
 0x6fd   :  { %v588_v15 = vadd.f32 0.05243302, %v587_v5 }
 0x6fe   :  { %v600_v1 = vmul.f32 %v599_v62, %v582_v45  ;;  %v625_v2 = vmul.f32 %v624_v63, %v622_v57  ;;  %v636_v4 = vmul.f32 %v635_v0, %v622_v57 }
 0x6ff   :  { %v589_v20 = vmul.f32 %v588_v15, %v582_v45 }
 0x700   :  { %v601_v6 = vadd.f32 0.4994258, %v600_v1  ;;  %v626_v8 = vadd.f32 0.0036580483, %v625_v2  ;;  %v637_v10 = vadd.f32 0.014752088, %v636_v4 }
 0x701   :  { %v590_v27 = vadd.f32 0.18741608, %v589_v20  ;;  %v571_v4 = vmul.f32 0.5, %v1995_v49 }
 0x702   :  { %v602_v11 = vmul.f32 %v601_v6, %v582_v45  ;;  %v638_v14 = vmul.f32 %v637_v10, %v622_v57  ;;  %v627_v17 = vmul.f32 %v626_v8, %v622_v57 }
 0x703   :  { %v591_v35 = vmul.f32 %v590_v27, %v582_v45 }
 0x704   :  { %v603_v16 = vadd.f32 1.0, %v602_v11  ;;  %v639_v18 = vadd.f32 0.112945676, %v638_v14  ;;  %v628_v21 = vadd.f32 0.05243302, %v627_v17  ;;  %v692_v11 = vpop.permute.xlu1 %691 }
 0x705   :  { %v592_v44 = vadd.f32 1.1283791, %v591_v35  ;;  %v1501_v35 = vld [vmem:[%s2234_s2 + $0x20] sm:$0xf] }
 0x706   :  { %1655 = vrcp.f32 %v603_v16  ;;  %v640_v19 = vmul.f32 %v639_v18, %v622_v57  ;;  %v629_v33 = vmul.f32 %v628_v21, %v622_v57  ;;  %v615_v37 = vand.u32 2147483648, %v603_v16 }
 0x707   :  { %v613_v39 = vand.u32 2147483647, %v603_v16  ;;  %vm609_vm4 = vweird.f32 %v603_v16  ;;  %v593_v54 = vmul.f32 %v592_v44, %v1991_v43  ;;  %v758_v18 = vperm.slane %v1824_v7, 5  ;;  %v1505_v7 = vld [vmem:[%s2234_s2 + $0x30] sm:$0xf] }
 0x708   :  { %v641_v22 = vadd.f32 0.4994258, %v640_v19  ;;  %v630_v38 = vadd.f32 0.18741608, %v629_v33  ;;  %v616_v48 = vor.u32 1.1754944e-38, %v615_v37 }
 0x709   :  { %vm614_vm6 = vcmp.eq.f32.partialorder %v613_v39, 8.507059e+37 }
 0x70a   :  { %v642_v24 = vmul.f32 %v641_v22, %v622_v57  ;;  %v631_v9 = vmul.f32 %v630_v38, %v622_v57 }
 0x70c   :  { %v1656_v26 = vpop.eup %1655  ;;  %v643_v34 = vadd.f32 1.0, %v642_v24  ;;  %v632_v45 = vadd.f32 1.1283791, %v631_v9 }
 0x70d   :  { %v605_v29 = vmul.f32 %v1656_v26, %v603_v16  ;;  %vm610_vm3 = vweird.f32 %v1656_v26 }
 0x70e   :  { %1657 = vrcp.f32 %v643_v34  ;;  %vm611_vm5 = vmor %vm609_vm4, %vm610_vm3  ;;  %v655_v56 = vand.u32 2147483648, %v643_v34  ;;  %v653_v59 = vand.u32 2147483647, %v643_v34  ;;  %vm649_vm11 = vweird.f32 %v643_v34 }
 0x70f   :  { %v606_v30 = vsub.f32 1.0, %v605_v29  ;;  %v633_v63 = vmul.f32 %v632_v45, %v1999_v51  ;;  %v1556_v29 = vld [vmem:[%s2234_s2 + $0x34] sm:$0xf0] }
 0x710   :  { %v656_v61 = vor.u32 1.1754944e-38, %v655_v56  ;;  %vm654_vm13 = vcmp.eq.f32.partialorder %v653_v59, 8.507059e+37  ;;  %v2036_v33 = vor.u32 %v1556_v29, %v1505_v7 }
 0x711   :  { %v607_v36 = vmul.f32 %v1656_v26, %v606_v30 }
 0x712   :  { %804 = vmatpush.bf16.msrb.mxu2 %v2036_v33 }
 0x713   :  { %v608_v40 = vadd.f32 %v1656_v26, %v607_v36  ;;  %v1554_v36 = vld [vmem:[%s2234_s2 + $0x24] sm:$0xf0] }
 0x714   :  { %v1658_v46 = vpop.eup %1657  ;;  %v2046_v38 = vor.u32 %v1554_v36, %v1501_v35 }
 0x715   :  { %v612_v47 = vsel %vm611_vm5, %v1656_v26, %v608_v40  ;;  %v645_v50 = vmul.f32 %v1658_v46, %v643_v34  ;;  %vm650_vm7 = vweird.f32 %v1658_v46 }
 0x716   :  { %v617_v52 = vsel %vm614_vm6, %v616_v48, %v612_v47  ;;  %vm651_vm12 = vmor %vm649_vm11, %vm650_vm7  ;;  %805 = vmatpush.bf16.msrb.mxu2 %v2046_v38 }
 0x717   :  { %v646_v53 = vsub.f32 1.0, %v645_v50  ;;  %v618_v55 = vmul.f32 %v617_v52, %v593_v54 }
 0x719   :  { %v647_v58 = vmul.f32 %v1658_v46, %v646_v53  ;;  %v1468_v62 = vclamps-f32 %v618_v55, 1.0 }
 0x71b   :  { %v648_v60 = vadd.f32 %v1658_v46, %v647_v58  ;;  %v661_v2 = vadd.f32 1.0, %v1468_v62 }
 0x71d   :  { %v652_v57 = vsel %vm651_vm12, %v1658_v46, %v648_v60  ;;  %v663_v6 = vmul.f32 %v661_v2, %v570_v3  ;;  %v2057_v3 = vld [vmem:[#allocation2] sm:$0xff] }
 0x71e   :  { %v657_v0 = vsel %vm654_vm13, %v656_v61, %v652_v57 }
 0x71f   :  { %v658_v1 = vmul.f32 %v657_v0, %v633_v63 }
 0x721   :  { %v1469_v43 = vclamps-f32 %v658_v1, 1.0 }
 0x723   :  { %v662_v5 = vadd.f32 1.0, %v1469_v43 }
 0x725   :  { %v664_v8 = vmul.f32 %v662_v5, %v571_v4  ;;  %v782_v4 = vperm.slane %v2057_v3, 6 }
 0x727   :  { %v665_v10 = vpack.c.bf16 %v664_v8, %v663_v6 }
 0x729   :  { %1486 = vmatmul.msk.bf16.vlgmr.msra.gmra.mxu3 %vm694_vm14, %v665_v10 }
 0x7ac   :  { %v707_v13 = vpop.f32.mrf.mxu3 }
 0x7ad   :  { %v708_v51 = vadd.f32 %v707_v13, %v692_v11 }
 0x7af   :  { %v712_v14 = vadd.f32 %v708_v51, %v1977_v31 }
 0x7b1   :  { %v714_v15 = vsel %vm44_vm0, %v712_v14, 0.0 }
 0x7b2   :  { %715 = vadd.xlane.f32.xlu2 %v714_v15 }
 0x7b4   :  { %v709_v16 = vpop.f32.mrf.mxu3 }
 0x7b5   :  { %v710_v17 = vadd.f32 %v709_v16, %v692_v11 }
 0x7b7   :  { %v713_v42 = vadd.f32 %v710_v17, %v1979_v32 }
 0x7b9   :  { %v717_v49 = vsel %vm44_vm0, %v713_v42, 0.0 }
 0x7ba   :  { %718 = vadd.xlane.f32.xlu0 %v717_v49 }
 0x7ce   :  { %762 = vrot.lane.b32.xlu0 %v758_v18, %s1764_s28 }
 0x825   :  { %v716_v25 = vpop.xlane.xlu2 %715 }
 0x826   :  { %v720_v19 = vmul.f32 %v716_v25, %v1828_v12 }
 0x828   :  { %v722_v20 = vsub.f32 %v712_v14, %v720_v19 }
 0x82a   :  { %v724_v21 = vmul.f32 %v722_v20, %v722_v20 }
 0x82c   :  { %v726_v31 = vsel %vm44_vm0, %v724_v21, 0.0 }
 0x82d   :  { %v719_v22 = vpop.xlane.xlu0 %718  ;;  %727 = vadd.xlane.f32.xlu1 %v726_v31 }
 0x82e   :  { %v721_v24 = vmul.f32 %v719_v22, %v1828_v12 }
 0x830   :  { %v723_v26 = vsub.f32 %v713_v42, %v721_v24 }
 0x832   :  { %v725_v32 = vmul.f32 %v723_v26, %v723_v26 }
 0x834   :  { %v729_v27 = vsel %vm44_vm0, %v725_v32, 0.0 }
 0x835   :  { %730 = vadd.xlane.f32.xlu2 %v729_v27 }
 0x840   :  { %v763_v57 = vpop.permute.xlu0 %762 }
 0x8a0   :  { %v728_v34 = vpop.xlane.xlu1 %727 }
 0x8a1   :  { %v732_v30 = vmul.f32 %v728_v34, %v1828_v12 }
 0x8a3   :  { %v734_v37 = vadd.f32 1e-05, %v732_v30 }
 0x8a5   :  { %1659 = vrsqrt.f32 %v734_v37  ;;  %vm742_vm1 = vweird.f32 %v734_v37 }
 0x8a8   :  { %v731_v39 = vpop.xlane.xlu2 %730 }
 0x8a9   :  { %v733_v40 = vmul.f32 %v731_v39, %v1828_v12 }
 0x8ab   :  { %v1660_v44 = vpop.eup %1659  ;;  %v735_v46 = vadd.f32 1e-05, %v733_v40 }
 0x8ac   :  { %v737_v47 = vmul.f32 %v1660_v44, %v734_v37  ;;  %vm743_vm15 = vweird.f32 %v1660_v44 }
 0x8ad   :  { %1661 = vrsqrt.f32 %v735_v46  ;;  %vm744_vm2 = vmor %vm742_vm1, %vm743_vm15  ;;  %vm752_vm4 = vweird.f32 %v735_v46 }
 0x8ae   :  { %v738_v48 = vmul.f32 %v1660_v44, %v737_v47 }
 0x8b0   :  { %v739_v9 = vmul.f32 0.5, %v738_v48 }
 0x8b2   :  { %v740_v50 = vsub.f32 1.5, %v739_v9 }
 0x8b3   :  { %v1662_v52 = vpop.eup %1661 }
 0x8b4   :  { %v741_v54 = vmul.f32 %v1660_v44, %v740_v50  ;;  %v747_v53 = vmul.f32 %v1662_v52, %v735_v46  ;;  %vm753_vm3 = vweird.f32 %v1662_v52 }
 0x8b5   :  { %vm754_vm5 = vmor %vm752_vm4, %vm753_vm3 }
 0x8b6   :  { %v748_v45 = vmul.f32 %v1662_v52, %v747_v53  ;;  %v745_v55 = vsel %vm744_vm2, %v1660_v44, %v741_v54 }
 0x8b7   :  { %v756_v59 = vmul.f32 %v745_v55, %v722_v20 }
 0x8b8   :  { %v749_v56 = vmul.f32 0.5, %v748_v45 }
 0x8b9   :  { %v759_v63 = vmul.f32 %v758_v18, %v756_v59 }
 0x8ba   :  { %v750_v58 = vsub.f32 1.5, %v749_v56 }
 0x8bb   :  { %v2050_v1 = vadd.f32 %v763_v57, %v759_v63 }
 0x8bc   :  { %v751_v60 = vmul.f32 %v1662_v52, %v750_v58 }
 0x8be   :  { %v755_v61 = vsel %vm754_vm5, %v1662_v52, %v751_v60 }
 0x8bf   :  { %v757_v62 = vmul.f32 %v755_v61, %v723_v26 }
 0x8c1   :  { %v760_v0 = vmul.f32 %v758_v18, %v757_v62 }
 0x8c3   :  { %v2052_v2 = vadd.f32 %v763_v57, %v760_v0 }
 0x8c5   :  { %v781_v43 = vpack.c.bf16 %v2052_v2, %v2050_v1 }
 0x8c7   :  { %1507 = vmatmul.msk.bf16.vlgmr.msrb.gmra.mxu2 %vm44_vm0, %v781_v43 }
 0x94a   :  { %v807_v5 = vpop.f32.mrf.mxu2 }
 0x94b   :  { %v808_v6 = vadd.f32 %v807_v5, %v782_v4 }
 0x94d   :  { %v812_v8 = vmul.f32 0.35355338, %v808_v6  ;;  %v816_v11 = vpack.c.bf16 %v808_v6, %v808_v6 }
 0x94f   :  { %v814_v51 = vpack.c.bf16 %v812_v8, %v812_v8  ;;  %v825_v16 = vunpack.c.l.b16 %v816_v11 }
 0x951   :  { %v820_v49 = vunpack.c.l.b16 %v814_v51 }
 0x952   :  { %v809_v10 = vpop.f32.mrf.mxu2 }
 0x953   :  { %v810_v13 = vadd.f32 %v809_v10, %v782_v4 }
 0x955   :  { %v813_v14 = vmul.f32 0.35355338, %v810_v13  ;;  %v817_v15 = vpack.c.bf16 %v810_v13, %v810_v13 }
 0x957   :  { %v815_v17 = vpack.c.bf16 %v813_v14, %v813_v14  ;;  %v826_v42 = vunpack.c.l.b16 %v817_v15 }
 0x959   :  { %v821_v18 = vunpack.c.l.b16 %v815_v17  ;;  %v2060_v25 = vpack.c.b16 %v826_v42, %v825_v16 }
 0x95b   :  { %v822_v19 = vpack.c.b16 %v821_v18, %v820_v49  ;;  %962 = vrot.lane.b32.xlu1 %v2060_v25, %s1770_s16  ;;  %895 = vrot.lane.b32.xlu2 %v2060_v25, %s1765_s11 }
 0x95d   :  { %893 = vrot.lane.b32.xlu0 %v822_v19, %s1766_s12 }
 0x963   :  { %1029 = vrot.lane.b32.xlu2 %v2060_v25, %s1767_s13 }
 0x965   :  { %828 = vrot.lane.b32.xlu0 %v2060_v25, %s1764_s28 }
 0x96b   :  { %960 = vrot.lane.b32.xlu2 %v822_v19, %s1768_s14 }
 0x96d   :  { %1027 = vrot.lane.b32.xlu0 %v822_v19, %s1769_s15 }
 0x9b5   :  { %v896_v20 = vpop.permute.xlu2 %895 }
 0x9b6   :  { %v901_v21 = vsel %vm166_vm8, %v896_v20, 0 }
 0x9b7   :  { %910 = vmatpush.bf16.xpose.msrb.mxu3 %v901_v21 }
 0x9bd   :  { %v1030_v31 = vpop.permute.xlu2 %1029 }
 0x9be   :  { %v1035_v22 = vsel %vm166_vm8, %v1030_v31, 0 }
 0x9bf   :  { %1044 = vmatpush.bf16.xpose.msra.mxu3 %v1035_v22 }
 0x9c5   :  { %v961_v34 = vpop.permute.xlu2 %960 }
 0x9cd   :  { %v963_v26 = vpop.permute.xlu1 %962 }
 0x9ce   :  { %v968_v7 = vsel %vm166_vm8, %v963_v26, 0 }
 0x9cf   :  { %v894_v24 = vpop.permute.xlu0 %893 }
 0x9d0   :  { %1510 = vmatmul.msk.bf16.vlgmr.msrb.gmra.mxu3 %vm166_vm8, %v894_v24 }
 0x9d7   :  { %v829_v32 = vpop.permute.xlu0 %828 }
 0x9d8   :  { %v834_v27 = vsel %vm166_vm8, %v829_v32, 0 }
 0x9d9   :  { %843 = vmatpush.bf16.xpose.msrb.mxu0 %v834_v27 }
 0x9df   :  { %v1028_v29 = vpop.permute.xlu0 %1027 }
 0x9e0   :  { %1508 = vmatmul.msk.bf16.vlgmr.msrb.gmra.mxu0 %vm166_vm8, %v822_v19  ;;  %1514 = vmatmul.msk.bf16.vlgmr.msra.gmra.mxu3 %vm166_vm8, %v1028_v29 }
 0x9e1   :  { %977 = vmatpush.bf16.xpose.msra.mxu0 %v968_v7 }
 0x9f0   :  { %1512 = vmatmul.msk.bf16.vlgmr.msra.gmra.mxu0 %vm166_vm8, %v961_v34 }
 0xa53   :  { %v912_v30 = vpop.f32.mrf.mxu3 }
 0xa54   :  { %v913_v35 = vadd.f32 %v912_v30, %v1886_v23 }
 0xa56   :  { %v917_v36 = vsel %vm187_vm9, %v913_v35, -inf }
 0xa57   :  { %918 = vmax.xlane.f32.xlu0 %v917_v36 }
 0xa5b   :  { %v914_v37 = vpop.f32.mrf.mxu3 }
 0xa5c   :  { %v915_v39 = vadd.f32 %v914_v37, %v1893_v28 }
 0xa5d   :  { %v845_v40 = vpop.f32.mrf.mxu0 }
 0xa5e   :  { %v846_v44 = vadd.f32 %v845_v40, %v1886_v23  ;;  %v920_v46 = vsel %vm187_vm9, %v915_v39, -inf }
 0xa5f   :  { %921 = vmax.xlane.f32.xlu2 %v920_v46 }
 0xa60   :  { %v850_v47 = vsel %vm187_vm9, %v846_v44, -inf }
 0xa61   :  { %851 = vmax.xlane.f32.xlu1 %v850_v47 }
 0xa63   :  { %v1046_v53 = vpop.f32.mrf.mxu3 }
 0xa64   :  { %v1047_v56 = vadd.f32 %v1046_v53, %v1886_v23 }
 0xa65   :  { %v847_v48 = vpop.f32.mrf.mxu0 }
 0xa66   :  { %v848_v9 = vadd.f32 %v847_v48, %v1893_v28  ;;  %v1051_v60 = vsel %vm187_vm9, %v1047_v56, -inf }
 0xa68   :  { %v853_v50 = vsel %vm187_vm9, %v848_v9, -inf }
 0xa69   :  { %854 = vmax.xlane.f32.xlu0 %v853_v50 }
 0xa6b   :  { %v1048_v61 = vpop.f32.mrf.mxu3 }
 0xa6c   :  { %v1049_v62 = vadd.f32 %v1048_v61, %v1893_v28 }
 0xa6d   :  { %v979_v52 = vpop.f32.mrf.mxu0 }
 0xa6e   :  { %v980_v54 = vadd.f32 %v979_v52, %v1886_v23  ;;  %v1054_v63 = vsel %vm187_vm9, %v1049_v62, -inf }
 0xa70   :  { %v984_v45 = vsel %vm187_vm9, %v980_v54, -inf }
 0xa71   :  { %985 = vmax.xlane.f32.xlu2 %v984_v45 }
 0xa75   :  { %v981_v55 = vpop.f32.mrf.mxu0 }
 0xa76   :  { %v2093_v58 = vadd.f32 %v981_v55, %v1893_v28 }
 0xa78   :  { %v987_v59 = vsel %vm187_vm9, %v2093_v58, -inf }
 0xa79   :  { %988 = vmax.xlane.f32.xlu0 %v987_v59  ;;  %1052 = vmax.xlane.f32.xlu2 %v1051_v60 }
 0xa81   :  { %1055 = vmax.xlane.f32.xlu0 %v1054_v63 }
 0xaca   :  { %v919_v57 = vpop.xlane.xlu0 %918 }
 0xacb   :  { %v923_v0 = vsub.f32 %v913_v35, %v919_v57 }
 0xacd   :  { %v925_v23 = vmul.f32 1.442695, %v923_v0 }
 0xacf   :  { %1663 = vpow2.f32 %v925_v23 }
 0xad2   :  { %v922_v43 = vpop.xlane.xlu2 %921 }
 0xad3   :  { %v924_v4 = vsub.f32 %v915_v39, %v922_v43 }
 0xad4   :  { %v852_v5 = vpop.xlane.xlu1 %851 }
 0xad5   :  { %v2100_v6 = vpop.eup %1663  ;;  %v927_v8 = vmul.f32 1.442695, %v924_v4  ;;  %v856_v10 = vsub.f32 %v846_v44, %v852_v5 }
 0xad6   :  { %v929_v11 = vsel %vm187_vm9, %v2100_v6, 0.0 }
 0xad7   :  { %1665 = vpow2.f32 %v927_v8  ;;  %v858_v13 = vmul.f32 1.442695, %v856_v10  ;;  %930 = vadd.xlane.f32.xlu2 %v929_v11 }
 0xad9   :  { %1667 = vpow2.f32 %v858_v13 }
 0xadc   :  { %v855_v28 = vpop.xlane.xlu0 %854 }
 0xadd   :  { %v1666_v51 = vpop.eup %1665  ;;  %v857_v14 = vsub.f32 %v848_v9, %v855_v28 }
 0xade   :  { %v932_v15 = vsel %vm187_vm9, %v1666_v51, 0.0 }
 0xadf   :  { %v1668_v16 = vpop.eup %1667  ;;  %v860_v17 = vmul.f32 1.442695, %v857_v14  ;;  %933 = vadd.xlane.f32.xlu1 %v932_v15 }
 0xae0   :  { %v862_v42 = vsel %vm187_vm9, %v1668_v16, 0.0 }
 0xae1   :  { %1669 = vpow2.f32 %v860_v17  ;;  %863 = vadd.xlane.f32.xlu0 %v862_v42 }
 0xae4   :  { %v986_v49 = vpop.xlane.xlu2 %985 }
 0xae5   :  { %v990_v18 = vsub.f32 %v980_v54, %v986_v49 }
 0xae7   :  { %v1670_v19 = vpop.eup %1669  ;;  %v992_v20 = vmul.f32 1.442695, %v990_v18 }
 0xae8   :  { %v865_v21 = vsel %vm187_vm9, %v1670_v19, 0.0 }
 0xae9   :  { %1671 = vpow2.f32 %v992_v20  ;;  %866 = vadd.xlane.f32.xlu2 %v865_v21 }
 0xaec   :  { %v1053_v31 = vpop.xlane.xlu2 %1052  ;;  %v989_v22 = vpop.xlane.xlu0 %988 }
 0xaed   :  { %v1057_v24 = vsub.f32 %v1047_v56, %v1053_v31  ;;  %v991_v39 = vsub.f32 %v2093_v58, %v989_v22 }
 0xaef   :  { %v2107_v26 = vpop.eup %1671  ;;  %v1059_v32 = vmul.f32 1.442695, %v1057_v24  ;;  %v994_v40 = vmul.f32 1.442695, %v991_v39 }
 0xaf0   :  { %v996_v27 = vsel %vm187_vm9, %v2107_v26, 0.0 }
 0xaf1   :  { %1673 = vpow2.f32 %v1059_v32  ;;  %997 = vadd.xlane.f32.xlu2 %v996_v27 }
 0xaf4   :  { %v1056_v7 = vpop.xlane.xlu0 %1055 }
 0xaf5   :  { %v1058_v29 = vsub.f32 %v1049_v62, %v1056_v7  ;;  %873 = vrot.lane.b32.xlu0 %v2060_v25, %s1771_s1 }
 0xaf7   :  { %v1674_v34 = vpop.eup %1673  ;;  %v1061_v30 = vmul.f32 1.442695, %v1058_v29 }
 0xaf8   :  { %940 = vrot.lane.b32.xlu1 %v2060_v25, %s1772_s21  ;;  %v1063_v35 = vsel %vm187_vm9, %v1674_v34, 0.0 }
 0xaf9   :  { %1675 = vpow2.f32 %v1061_v30  ;;  %1064 = vadd.xlane.f32.xlu2 %v1063_v35 }
 0xafa   :  { %1677 = vpow2.f32 %v994_v40 }
 0xafd   :  { %1074 = vrot.lane.b32.xlu0 %v2060_v25, %s1773_s22 }
 0xaff   :  { %v1676_v36 = vpop.eup %1675 }
 0xb00   :  { %v1066_v37 = vsel %vm187_vm9, %v1676_v36, 0.0  ;;  %v1678_v44 = vpop.eup %1677 }
 0xb01   :  { %1067 = vadd.xlane.f32.xlu2 %v1066_v37  ;;  %v999_v46 = vsel %vm187_vm9, %v1678_v44, 0.0 }
 0xb05   :  { %1128 = vrot.lane.b32.xlu0 %v2036_v33, %s1775_s26 }
 0xb19   :  { %1007 = vrot.lane.b32.xlu2 %v2060_v25, %s1774_s25 }
 0xb22   :  { %1000 = vadd.xlane.f32.xlu1 %v999_v46 }
 0xb4a   :  { %v931_v47 = vpop.xlane.xlu2 %930 }
 0xb52   :  { %v934_v9 = vpop.xlane.xlu1 %933 }
 0xb54   :  { %v864_v48 = vpop.xlane.xlu0 %863 }
 0xb5c   :  { %v867_v50 = vpop.xlane.xlu2 %866 }
 0xb5d   :  { %1679 = vrcp.f32 %v867_v50 }
 0xb5e   :  { %1681 = vrcp.f32 %v864_v48 }
 0xb5f   :  { %1683 = vrcp.f32 %v934_v9  ;;  %v2143_v9 = vld [vmem:[#allocation2 + $0x8] sm:$0x7] }
 0xb60   :  { %1685 = vrcp.f32 %v931_v47  ;;  %v1125_v50 = vperm.slane %v2143_v9, 0 }
 0xb63   :  { %v1680_v33 = vpop.eup %1679 }
 0xb64   :  { %v1682_v52 = vpop.eup %1681  ;;  %v998_v54 = vpop.xlane.xlu2 %997  ;;  %v871_v45 = vmul.f32 %v1680_v33, %v1670_v19 }
 0xb65   :  { %v1684_v53 = vpop.eup %1683  ;;  %v870_v55 = vmul.f32 %v1682_v52, %v1668_v16 }
 0xb66   :  { %v1686_v56 = vpop.eup %1685  ;;  %v938_v58 = vmul.f32 %v1684_v53, %v1666_v51 }
 0xb67   :  { %v874_v25 = vpop.permute.xlu0 %873  ;;  %v872_v59 = vpack.c.bf16 %v871_v45, %v870_v55  ;;  %v937_v60 = vmul.f32 %v1686_v56, %v2100_v6 }
 0xb68   :  { %886 = vmatpush.bf16.msrb.mxu1 %v874_v25 }
 0xb69   :  { %v939_v62 = vpack.c.bf16 %v938_v58, %v937_v60 }
 0xb6a   :  { %v941_v61 = vpop.permute.xlu1 %940 }
 0xb6b   :  { %1509 = vmatmul.msk.bf16.vlgmr.msrb.gmra.mxu1 %vm187_vm9, %v872_v59  ;;  %953 = vmatpush.bf16.msra.mxu2 %v941_v61 }
 0xb6c   :  { %v1065_v63 = vpop.xlane.xlu2 %1064 }
 0xb6d   :  { %1687 = vrcp.f32 %v1065_v63 }
 0xb6e   :  { %1511 = vmatmul.msk.bf16.vlgmr.msra.gmra.mxu2 %vm187_vm9, %v939_v62 }
 0xb6f   :  { %v1075_v57 = vpop.permute.xlu0 %1074 }
 0xb70   :  { %1087 = vmatpush.bf16.msrb.mxu2 %v1075_v57 }
 0xb73   :  { %v1688_v23 = vpop.eup %1687 }
 0xb74   :  { %v1068_v0 = vpop.xlane.xlu2 %1067  ;;  %v1071_v4 = vmul.f32 %v1688_v23, %v1674_v34  ;;  %v1195_v23 = vperm.slane %v2143_v9, 1 }
 0xb75   :  { %1689 = vrcp.f32 %v1068_v0 }
 0xb76   :  { %1691 = vrcp.f32 %v998_v54 }
 0xb77   :  { %v1129_v20 = vpop.permute.xlu0 %1128 }
 0xb78   :  { %1141 = vmatpush.bf16.msrb.mxu0 %v1129_v20 }
 0xb7b   :  { %v1690_v43 = vpop.eup %1689 }
 0xb7c   :  { %v1072_v5 = vmul.f32 %v1690_v43, %v1676_v36  ;;  %v1008_v8 = vpop.permute.xlu2 %1007  ;;  %v1692_v11 = vpop.eup %1691  ;;  %v1555_v43 = vld [vmem:[%s2234_s2 + $0x34] sm:$0xf] }
 0xb7d   :  { %1020 = vmatpush.bf16.msra.mxu1 %v1008_v8  ;;  %v1004_v28 = vmul.f32 %v1692_v11, %v2107_v26  ;;  %v1517_v11 = vld [vmem:[%s2234_s2 + $0x28] sm:$0xf0] }
 0xb7e   :  { %v1073_v6 = vpack.c.bf16 %v1072_v5, %v1071_v4  ;;  %v1521_v4 = vld [vmem:[%s2234_s2 + $0x38] sm:$0xf0] }
 0xb7f   :  { %v1524_v5 = vor.u32 %v1555_v43, %v1521_v4  ;;  %v1559_v43 = vld [vmem:[%s2235_s3 + $0x30] sm:$0xff] }
 0xb80   :  { %1515 = vmatmul.msk.bf16.vlgmr.msrb.gmra.mxu2 %vm187_vm9, %v1073_v6 }
 0xb81   :  { %1223 = vmatpush.bf16.msrb.mxu1 %v1524_v5 }
 0xb95   :  { %v1001_v10 = vpop.xlane.xlu1 %1000 }
 0xb96   :  { %1693 = vrcp.f32 %v1001_v10  ;;  %v1553_v10 = vld [vmem:[%s2234_s2 + $0x24] sm:$0xf] }
 0xb9c   :  { %v1694_v13 = vpop.eup %1693 }
 0xb9d   :  { %v1005_v51 = vmul.f32 %v1694_v13, %v1678_v44 }
 0xb9f   :  { %v1006_v14 = vpack.c.bf16 %v1005_v51, %v1004_v28  ;;  %v1520_v28 = vor.u32 %v1553_v10, %v1517_v11 }
 0xba1   :  { %1513 = vmatmul.msk.bf16.vlgmr.msra.gmra.mxu1 %vm187_vm9, %v1006_v14 }
 0xba2   :  { %1224 = vmatpush.bf16.msrb.mxu1 %v1520_v28 }
 0xbe8   :  { %v888_v18 = vpop.f32.mrf.mxu1 }
 0xbf0   :  { %v890_v21 = vpop.f32.mrf.mxu1 }
 0xbf1   :  { %v955_v15 = vpop.f32.mrf.mxu2 }
 0xbf9   :  { %v957_v16 = vpop.f32.mrf.mxu2 }
 0xbfa   :  { %v1596_v17 = vpack.i.bf16 %v957_v16, %v955_v15 }
 0xbfc   :  { %1597 = vrot.lane.b32.xlu0 %v1596_v17, %s1762_s24 }
 0xc03   :  { %v1089_v42 = vpop.f32.mrf.mxu2 }
 0xc0b   :  { %v1091_v49 = vpop.f32.mrf.mxu2 }
 0xc0c   :  { %v1606_v19 = vpack.i.bf16 %v1091_v49, %v1089_v42 }
 0xc0e   :  { %1607 = vrot.lane.b32.xlu2 %v1606_v19, %s1777_s27 }
 0xc1e   :  { %v1022_v31 = vpop.f32.mrf.mxu1 }
 0xc26   :  { %v1024_v22 = vpop.f32.mrf.mxu1 }
 0xc27   :  { %v1601_v24 = vpack.i.bf16 %v1024_v22, %v1022_v31 }
 0xc29   :  { %1602 = vrot.lane.b32.xlu0 %v1601_v24, %s1776_s4 }
 0xc31   :  { %1126 = vrot.lane.b32.xlu0 %v2046_v38, %s1775_s26 }
 0xc68   :  { %v1608_v30 = vpop.permute.xlu2 %1607 }
 0xc69   :  { %v1610_v40 = vunpack.i.h.bf16 %v1608_v30  ;;  %v1609_v44 = vunpack.i.l.bf16 %v1608_v30 }
 0xc6e   :  { %v1598_v26 = vpop.permute.xlu0 %1597 }
 0xc6f   :  { %v1600_v32 = vunpack.i.h.bf16 %v1598_v26  ;;  %v1599_v27 = vunpack.i.l.bf16 %v1598_v26 }
 0xc71   :  { %v1119_v35 = vsel %vm166_vm8, %v890_v21, %v1600_v32  ;;  %v1118_v36 = vsel %vm166_vm8, %v888_v18, %v1599_v27 }
 0xc9b   :  { %v1603_v7 = vpop.permute.xlu0 %1602 }
 0xc9c   :  { %v1605_v29 = vunpack.i.h.bf16 %v1603_v7  ;;  %v1604_v34 = vunpack.i.l.bf16 %v1603_v7 }
 0xc9e   :  { %v1120_v37 = vsel %vm187_vm9, %v1118_v36, %v1604_v34  ;;  %v1121_v39 = vsel %vm187_vm9, %v1119_v35, %v1605_v29 }
 0xc9f   :  { %v1122_v46 = vsel %vm460_vm10, %v1120_v37, %v1609_v44  ;;  %v1123_v38 = vsel %vm460_vm10, %v1121_v39, %v1610_v40  ;;  %v1205_v40 = vperm.slane %v2057_v3, 7 }
 0xca0   :  { %v1124_v48 = vpack.c.bf16 %v1123_v38, %v1122_v46 }
 0xca3   :  { %v1127_v47 = vpop.permute.xlu0 %1126 }
 0xca4   :  { %1142 = vmatpush.bf16.msrb.mxu0 %v1127_v47 }
 0xca7   :  { %1516 = vmatmul.msk.bf16.vlgmr.msrb.gmra.mxu0 %vm44_vm0, %v1124_v48 }
 0xd24   :  { %v1144_v33 = vpop.f32.mrf.mxu0 }
 0xd25   :  { %v1145_v52 = vadd.f32 %v1144_v33, %v1125_v50 }
 0xd27   :  { %v1149_v54 = vadd.f32 %v1145_v52, %v2050_v1 }
 0xd29   :  { %v1151_v53 = vsel %vm44_vm0, %v1149_v54, 0.0 }
 0xd2a   :  { %1152 = vadd.xlane.f32.xlu2 %v1151_v53 }
 0xd2c   :  { %v1146_v45 = vpop.f32.mrf.mxu0 }
 0xd2d   :  { %v1147_v56 = vadd.f32 %v1146_v45, %v1125_v50 }
 0xd2f   :  { %v1150_v55 = vadd.f32 %v1147_v56, %v2052_v2 }
 0xd31   :  { %v1154_v25 = vsel %vm44_vm0, %v1150_v55, 0.0 }
 0xd32   :  { %1155 = vadd.xlane.f32.xlu0 %v1154_v25 }
 0xd42   :  { %1345 = vrot.lane.b32.xlu2 %v1125_v50, %s1764_s28 }
 0xd9d   :  { %v1153_v58 = vpop.xlane.xlu2 %1152 }
 0xd9e   :  { %v1157_v59 = vmul.f32 %v1153_v58, %v1828_v12 }
 0xda0   :  { %v1159_v60 = vsub.f32 %v1149_v54, %v1157_v59 }
 0xda2   :  { %v1161_v61 = vmul.f32 %v1159_v60, %v1159_v60 }
 0xda4   :  { %v1163_v62 = vsel %vm44_vm0, %v1161_v61, 0.0 }
 0xda5   :  { %v1156_v1 = vpop.xlane.xlu0 %1155  ;;  %1164 = vadd.xlane.f32.xlu1 %v1163_v62 }
 0xda6   :  { %v1158_v63 = vmul.f32 %v1156_v1, %v1828_v12  ;;  %v1560_v1 = vld [vmem:[%s2235_s3 + $0x38] sm:$0xff] }
 0xda7   :  { %1355 = vmatpush.bf16.msrb.mxu3 %v1560_v1 }
 0xda8   :  { %v1160_v57 = vsub.f32 %v1150_v55, %v1158_v63 }
 0xdaa   :  { %v1162_v0 = vmul.f32 %v1160_v57, %v1160_v57 }
 0xdab   :  { %1356 = vmatpush.bf16.msrb.mxu3 %v1559_v43 }
 0xdac   :  { %v1166_v2 = vsel %vm44_vm0, %v1162_v0, 0.0 }
 0xdad   :  { %1167 = vadd.xlane.f32.xlu1 %v1166_v2 }
 0xdc6   :  { %1199 = vrot.lane.b32.xlu1 %v1195_v23, %s1764_s28 }
 0xe18   :  { %v1165_v8 = vpop.xlane.xlu1 %1164 }
 0xe19   :  { %v1169_v6 = vmul.f32 %v1165_v8, %v1828_v12 }
 0xe1b   :  { %v1171_v13 = vadd.f32 1e-05, %v1169_v6 }
 0xe1d   :  { %1695 = vrsqrt.f32 %v1171_v13  ;;  %vm1179_vm9 = vweird.f32 %v1171_v13 }
 0xe20   :  { %v1168_v51 = vpop.xlane.xlu1 %1167 }
 0xe21   :  { %v1170_v14 = vmul.f32 %v1168_v51, %v1828_v12 }
 0xe23   :  { %v1696_v15 = vpop.eup %1695  ;;  %v1172_v16 = vadd.f32 1e-05, %v1170_v14 }
 0xe24   :  { %v1174_v17 = vmul.f32 %v1696_v15, %v1171_v13  ;;  %vm1180_vm8 = vweird.f32 %v1696_v15  ;;  %v1558_v13 = vld [vmem:[%s2235_s3 + $0x28] sm:$0xff] }
 0xe25   :  { %1697 = vrsqrt.f32 %v1172_v16  ;;  %vm1181_vm10 = vmor %vm1179_vm9, %vm1180_vm8  ;;  %vm1189_vm7 = vweird.f32 %v1172_v16  ;;  %1357 = vmatpush.bf16.msrb.mxu3 %v1558_v13 }
 0xe26   :  { %v1175_v42 = vmul.f32 %v1696_v15, %v1174_v17  ;;  %v1557_v17 = vld [vmem:[%s2235_s3 + $0x20] sm:$0xff]  ;;  %s1779_s3 = smov [#allocation5]  }
 0xe28   :  { %v1176_v49 = vmul.f32 0.5, %v1175_v42 }
 0xe29   :  { %1358 = vmatpush.bf16.msrb.mxu3 %v1557_v17 }
 0xe2a   :  { %v1177_v18 = vsub.f32 1.5, %v1176_v49 }
 0xe2b   :  { %v1698_v19 = vpop.eup %1697 }
 0xe2c   :  { %v1184_v20 = vmul.f32 %v1698_v19, %v1172_v16  ;;  %v1178_v21 = vmul.f32 %v1696_v15, %v1177_v18  ;;  %vm1190_vm6 = vweird.f32 %v1698_v19 }
 0xe2d   :  { %vm1191_vm11 = vmor %vm1189_vm7, %vm1190_vm6 }
 0xe2e   :  { %v1185_v31 = vmul.f32 %v1698_v19, %v1184_v20  ;;  %v1182_v26 = vsel %vm1181_vm10, %v1696_v15, %v1178_v21 }
 0xe2f   :  { %v1193_v27 = vmul.f32 %v1182_v26, %v1159_v60 }
 0xe30   :  { %v1186_v22 = vmul.f32 0.5, %v1185_v31 }
 0xe31   :  { %v1196_v30 = vmul.f32 %v1195_v23, %v1193_v27 }
 0xe32   :  { %v1187_v24 = vsub.f32 1.5, %v1186_v22 }
 0xe34   :  { %v1188_v32 = vmul.f32 %v1698_v19, %v1187_v24 }
 0xe36   :  { %v1192_v7 = vsel %vm1191_vm11, %v1698_v19, %v1188_v32 }
 0xe37   :  { %v1194_v29 = vmul.f32 %v1192_v7, %v1160_v57 }
 0xe38   :  { %v1200_v34 = vpop.permute.xlu1 %1199 }
 0xe39   :  { %v1197_v35 = vmul.f32 %v1195_v23, %v1194_v29  ;;  %v2171_v36 = vadd.f32 %v1200_v34, %v1196_v30 }
 0xe3b   :  { %v2173_v37 = vadd.f32 %v1200_v34, %v1197_v35 }
 0xe3d   :  { %v1204_v39 = vpack.c.bf16 %v2173_v37, %v2171_v36 }
 0xe3f   :  { %1525 = vmatmul.msk.bf16.vlgmr.msrb.gmra.mxu1 %vm44_vm0, %v1204_v39 }
 0xebc   :  { %v1226_v44 = vpop.f32.mrf.mxu1 }
 0xebd   :  { %v2179_v46 = vadd.f32 %v1226_v44, %v1205_v40 }
 0xebf   :  { %v2183_v38 = vmul.f32 %v2179_v46, %v1985_v41 }
 0xec1   :  { %v1235_v47 = vmul.f32 %v2183_v38, %v2183_v38 }
 0xec3   :  { %v1236_v48 = vmin.f32 %v1235_v47, 16.0 }
 0xec4   :  { %v1228_v50 = vpop.f32.mrf.mxu1 }
 0xec5   :  { %v1237_v33 = vmul.f32 2.1237322e-06, %v1236_v48  ;;  %v1248_v52 = vmul.f32 3.8918573e-05, %v1236_v48  ;;  %v2187_v54 = vadd.f32 %v1228_v50, %v1205_v40 }
 0xec7   :  { %v1238_v53 = vadd.f32 0.00028619796, %v1237_v33  ;;  %v1249_v45 = vadd.f32 0.001143296, %v1248_v52  ;;  %v2191_v3 = vmul.f32 %v2187_v54, %v1985_v41 }
 0xec9   :  { %v1250_v56 = vmul.f32 %v1249_v45, %v1236_v48  ;;  %v1275_v55 = vmul.f32 %v2191_v3, %v2191_v3  ;;  %v1239_v25 = vmul.f32 %v1238_v53, %v1236_v48 }
 0xecb   :  { %v1251_v58 = vadd.f32 0.014752088, %v1250_v56  ;;  %v1276_v59 = vmin.f32 %v1275_v55, 16.0  ;;  %v1240_v63 = vadd.f32 0.0036580483, %v1239_v25 }
 0xecd   :  { %v1252_v60 = vmul.f32 %v1251_v58, %v1236_v48  ;;  %v1277_v61 = vmul.f32 2.1237322e-06, %v1276_v59  ;;  %v1288_v62 = vmul.f32 3.8918573e-05, %v1276_v59  ;;  %v1241_v5 = vmul.f32 %v1240_v63, %v1236_v48 }
 0xecf   :  { %v1253_v57 = vadd.f32 0.112945676, %v1252_v60  ;;  %v1278_v0 = vadd.f32 0.00028619796, %v1277_v61  ;;  %v1289_v41 = vadd.f32 0.001143296, %v1288_v62 }
 0xed0   :  { %v1242_v51 = vadd.f32 0.05243302, %v1241_v5 }
 0xed1   :  { %v1254_v2 = vmul.f32 %v1253_v57, %v1236_v48  ;;  %v1279_v23 = vmul.f32 %v1278_v0, %v1276_v59  ;;  %v1290_v4 = vmul.f32 %v1289_v41, %v1276_v59  ;;  %v1231_v41 = vmul.f32 0.5, %v2179_v46 }
 0xed2   :  { %v1243_v49 = vmul.f32 %v1242_v51, %v1236_v48  ;;  %v1411_v51 = vperm.slane %v2143_v9, 2 }
 0xed3   :  { %v1255_v8 = vadd.f32 0.4994258, %v1254_v2  ;;  %v1280_v6 = vadd.f32 0.0036580483, %v1279_v23  ;;  %v1291_v10 = vadd.f32 0.014752088, %v1290_v4 }
 0xed4   :  { %v1244_v31 = vadd.f32 0.18741608, %v1243_v49  ;;  %v1232_v2 = vmul.f32 0.5, %v2187_v54  ;;  %1415 = vrot.lane.b32.xlu2 %v1411_v51, %s1764_s28  ;;  %s1426_s28 = sshll.u32 %s1779_s3, 4  ;;  %s1427_s28 = int_to_ptr.vmem [resolvable:$true] %s1426_s28 }
 0xed5   :  { %v1256_v11 = vmul.f32 %v1255_v8, %v1236_v48  ;;  %v1292_v28 = vmul.f32 %v1291_v10, %v1276_v59  ;;  %v1281_v15 = vmul.f32 %v1280_v6, %v1276_v59  ;;  %v1346_v8 = vpop.permute.xlu2 %1345 }
 0xed6   :  { %v1245_v27 = vmul.f32 %v1244_v31, %v1236_v48 }
 0xed7   :  { %v1257_v14 = vadd.f32 1.0, %v1256_v11  ;;  %v1293_v16 = vadd.f32 0.112945676, %v1292_v28  ;;  %v1282_v18 = vadd.f32 0.05243302, %v1281_v15 }
 0xed8   :  { %v1246_v39 = vadd.f32 1.1283791, %v1245_v27 }
 0xed9   :  { %1699 = vrcp.f32 %v1257_v14  ;;  %v1294_v42 = vmul.f32 %v1293_v16, %v1276_v59  ;;  %v1283_v24 = vmul.f32 %v1282_v18, %v1276_v59  ;;  %v1269_v29 = vand.u32 2147483648, %v1257_v14 }
 0xeda   :  { %v1267_v30 = vand.u32 2147483647, %v1257_v14  ;;  %vm1263_vm13 = vweird.f32 %v1257_v14  ;;  %v1247_v53 = vmul.f32 %v1246_v39, %v2183_v38 }
 0xedb   :  { %v1295_v19 = vadd.f32 0.4994258, %v1294_v42  ;;  %v1284_v34 = vadd.f32 0.18741608, %v1283_v24  ;;  %v1270_v47 = vor.u32 1.1754944e-38, %v1269_v29 }
 0xedc   :  { %vm1268_vm1 = vcmp.eq.f32.partialorder %v1267_v30, 8.507059e+37 }
 0xedd   :  { %v1296_v20 = vmul.f32 %v1295_v19, %v1276_v59  ;;  %v1285_v50 = vmul.f32 %v1284_v34, %v1276_v59 }
 0xedf   :  { %v1700_v21 = vpop.eup %1699  ;;  %v1297_v26 = vadd.f32 1.0, %v1296_v20  ;;  %v1286_v48 = vadd.f32 1.1283791, %v1285_v50 }
 0xee0   :  { %v1259_v22 = vmul.f32 %v1700_v21, %v1257_v14  ;;  %vm1264_vm12 = vweird.f32 %v1700_v21 }
 0xee1   :  { %1701 = vrcp.f32 %v1297_v26  ;;  %vm1265_vm15 = vmor %vm1263_vm13, %vm1264_vm12  ;;  %v1309_v56 = vand.u32 2147483648, %v1297_v26  ;;  %v1307_v58 = vand.u32 2147483647, %v1297_v26  ;;  %vm1303_vm3 = vweird.f32 %v1297_v26 }
 0xee2   :  { %v1260_v32 = vsub.f32 1.0, %v1259_v22  ;;  %v1287_v1 = vmul.f32 %v1286_v48, %v2191_v3 }
 0xee3   :  { %v1310_v61 = vor.u32 1.1754944e-38, %v1309_v56  ;;  %vm1308_vm5 = vcmp.eq.f32.partialorder %v1307_v58, 8.507059e+37 }
 0xee4   :  { %v1261_v7 = vmul.f32 %v1700_v21, %v1260_v32 }
 0xee6   :  { %v1262_v35 = vadd.f32 %v1700_v21, %v1261_v7 }
 0xee7   :  { %v1702_v40 = vpop.eup %1701 }
 0xee8   :  { %v1266_v44 = vsel %vm1265_vm15, %v1700_v21, %v1262_v35  ;;  %v1299_v33 = vmul.f32 %v1702_v40, %v1297_v26  ;;  %vm1304_vm2 = vweird.f32 %v1702_v40 }
 0xee9   :  { %v1271_v52 = vsel %vm1268_vm1, %v1270_v47, %v1266_v44  ;;  %vm1305_vm4 = vmor %vm1303_vm3, %vm1304_vm2 }
 0xeea   :  { %v1300_v45 = vsub.f32 1.0, %v1299_v33  ;;  %v1272_v55 = vmul.f32 %v1271_v52, %v1247_v53 }
 0xeec   :  { %v1301_v25 = vmul.f32 %v1702_v40, %v1300_v45  ;;  %v1526_v62 = vclamps-f32 %v1272_v55, 1.0 }
 0xeee   :  { %v1302_v60 = vadd.f32 %v1702_v40, %v1301_v25  ;;  %v1315_v0 = vadd.f32 1.0, %v1526_v62 }
 0xef0   :  { %v1306_v59 = vsel %vm1305_vm4, %v1702_v40, %v1302_v60  ;;  %v1317_v43 = vmul.f32 %v1315_v0, %v1231_v41 }
 0xef1   :  { %v1311_v63 = vsel %vm1308_vm5, %v1310_v61, %v1306_v59 }
 0xef2   :  { %v1312_v57 = vmul.f32 %v1311_v63, %v1287_v1 }
 0xef4   :  { %v1527_v38 = vclamps-f32 %v1312_v57, 1.0 }
 0xef6   :  { %v1316_v23 = vadd.f32 1.0, %v1527_v38 }
 0xef8   :  { %v1318_v4 = vmul.f32 %v1316_v23, %v1232_v2 }
 0xefa   :  { %v1319_v5 = vpack.c.bf16 %v1318_v4, %v1317_v43 }
 0xefc   :  { %1544 = vmatmul.msk.bf16.vlgmr.msrb.gmra.mxu3 %vm694_vm14, %v1319_v5 }
 0xf2e   :  { %v1416_v50 = vpop.permute.xlu2 %1415 }
 0xf7f   :  { %v1360_v6 = vpop.f32.mrf.mxu3 }
 0xf80   :  { %v1361_v10 = vadd.f32 %v1360_v6, %v1346_v8 }
 0xf82   :  { %v1365_v3 = vadd.f32 %v1361_v10, %v2171_v36 }
 0xf84   :  { %v1367_v11 = vsel %vm44_vm0, %v1365_v3, 0.0 }
 0xf85   :  { %1368 = vadd.xlane.f32.xlu0 %v1367_v11 }
 0xf87   :  { %v1362_v13 = vpop.f32.mrf.mxu3 }
 0xf88   :  { %v1363_v28 = vadd.f32 %v1362_v13, %v1346_v8 }
 0xf8a   :  { %v1366_v46 = vadd.f32 %v1363_v28, %v2173_v37 }
 0xf8c   :  { %v1370_v54 = vsel %vm44_vm0, %v1366_v46, 0.0 }
 0xf8d   :  { %1371 = vadd.xlane.f32.xlu1 %v1370_v54 }
 0xff8   :  { %v1369_v14 = vpop.xlane.xlu0 %1368 }
 0xff9   :  { %v1373_v15 = vmul.f32 %v1369_v14, %v1828_v12 }
 0xffb   :  { %v1375_v16 = vsub.f32 %v1365_v3, %v1373_v15 }
 0xffd   :  { %v1377_v17 = vmul.f32 %v1375_v16, %v1375_v16 }
 0xfff   :  { %v1379_v36 = vsel %vm44_vm0, %v1377_v17, 0.0 }
0x1000   :  { %v1372_v42 = vpop.xlane.xlu1 %1371  ;;  %1380 = vadd.xlane.f32.xlu0 %v1379_v36 }
0x1001   :  { %v1374_v49 = vmul.f32 %v1372_v42, %v1828_v12 }
0x1003   :  { %v1376_v18 = vsub.f32 %v1366_v46, %v1374_v49 }
0x1005   :  { %v1378_v37 = vmul.f32 %v1376_v18, %v1376_v18 }
0x1007   :  { %v1382_v19 = vsel %vm44_vm0, %v1378_v37, 0.0 }
0x1008   :  { %1383 = vadd.xlane.f32.xlu0 %v1382_v19 }
0x1073   :  { %v1381_v20 = vpop.xlane.xlu0 %1380 }
0x1074   :  { %v1385_v9 = vmul.f32 %v1381_v20, %v1828_v12 }
0x1076   :  { %v1387_v21 = vadd.f32 1e-05, %v1385_v9 }
0x1078   :  { %1703 = vrsqrt.f32 %v1387_v21  ;;  %vm1395_vm8 = vweird.f32 %v1387_v21 }
0x107b   :  { %v1384_v31 = vpop.xlane.xlu0 %1383 }
0x107c   :  { %v1386_v22 = vmul.f32 %v1384_v31, %v1828_v12 }
0x107e   :  { %v1704_v24 = vpop.eup %1703  ;;  %v1388_v26 = vadd.f32 1e-05, %v1386_v22 }
0x107f   :  { %v1390_v32 = vmul.f32 %v1704_v24, %v1387_v21  ;;  %vm1396_vm14 = vweird.f32 %v1704_v24 }
0x1080   :  { %1705 = vrsqrt.f32 %v1388_v26  ;;  %vm1397_vm9 = vmor %vm1395_vm8, %vm1396_vm14  ;;  %vm1405_vm6 = vweird.f32 %v1388_v26 }
0x1081   :  { %v1391_v27 = vmul.f32 %v1704_v24, %v1390_v32 }
0x1083   :  { %v1392_v7 = vmul.f32 0.5, %v1391_v27 }
0x1085   :  { %v1393_v29 = vsub.f32 1.5, %v1392_v7 }
0x1086   :  { %v1706_v34 = vpop.eup %1705 }
0x1087   :  { %v1400_v30 = vmul.f32 %v1706_v34, %v1388_v26  ;;  %v1394_v35 = vmul.f32 %v1704_v24, %v1393_v29  ;;  %vm1406_vm10 = vweird.f32 %v1706_v34 }
0x1088   :  { %vm1407_vm7 = vmor %vm1405_vm6, %vm1406_vm10 }
0x1089   :  { %v1401_v39 = vmul.f32 %v1706_v34, %v1400_v30  ;;  %v1398_v40 = vsel %vm1397_vm9, %v1704_v24, %v1394_v35 }
0x108a   :  { %v1409_v44 = vmul.f32 %v1398_v40, %v1375_v16 }
0x108b   :  { %v1402_v47 = vmul.f32 0.5, %v1401_v39 }
0x108c   :  { %v1412_v33 = vmul.f32 %v1411_v51, %v1409_v44 }
0x108d   :  { %v1403_v12 = vsub.f32 1.5, %v1402_v47 }
0x108e   :  { %v1418_v52 = vadd.f32 %v1416_v50, %v1412_v33 }
0x108f   :  { %v1404_v53 = vmul.f32 %v1706_v34, %v1403_v12 }
0x1090   :  { %1420 = vst.msk [vmem:[#allocation5] sm:$0xff] %vm44_vm0, %v1418_v52 }
0x1091   :  { %v1408_v45 = vsel %vm1407_vm7, %v1706_v34, %v1404_v53 }
0x1092   :  { %v1410_v48 = vmul.f32 %v1408_v45, %v1376_v18 }
0x1094   :  { %v1413_v56 = vmul.f32 %v1411_v51, %v1410_v48 }
0x1096   :  { %v1419_v55 = vadd.f32 %v1416_v50, %v1413_v56 }
0x1098   :  { %1421 = vst.msk [vmem:[#allocation5 + $0x8] sm:$0xff] %vm44_vm0, %v1419_v55 }
0x1099   :  { %1434 = dma.vmem_to_hbm [thread:$0]  %s1427_s28, 256, %s1429_s7, [#allocation4], %s1761_s23, %s1761_s23, %s1762_s24  }
0x109a   :  { %1758 = dma.done.wait [#allocation4], 256  }
0x109b   :  { %1759 = vsyncadd [#allocation4], 4294967040 }
0x109c   :  { %1439 = vsyncpa [#allocation3], 1 }
0x109d   :  { %1440 = vsyncpa [#allocation4], 1 }

</bundles_post_ra>
